<compile_context>
chip_gen: v6e
topology: v6e:2x2x1
jax: 0.10.0
libtpu: 0.0.40
codegen_flags: <defaults>
</compile_context>

<pallas_src>
import functools

import jax
import jax.numpy as jnp
import numpy as np
from jax import lax
from jax.experimental import pallas as pl
from jax.experimental.pallas import tpu as pltpu


LEAKY_SLOPE = 0.2
BN_EPS = 1e-5
LANE = 128
DEFAULT_TM = 512


def _round_up(x, m):
    return ((x + m - 1) // m) * m


def _pick_tiles(m, k):
    """Row tile: multiple of 8 that divides the (8-padded) row count, capped by
    K so double-buffered (tm, K) bf16 tiles + resident weight fit comfortably
    in v5e's 16 MiB default scoped VMEM and v7x's 64 MiB physical VMEM."""
    cap = DEFAULT_TM
    if k >= 4096:
        cap = 128
    elif k >= 2048:
        cap = 256
    mp = _round_up(max(m, 1), 8)
    tm = min(cap, mp)
    while mp % tm:
        tm -= 8
    return mp, tm


def _vmem_limit_bytes(tm, k, cp):
    est = (2 * tm * k * 2        # double-buffered bf16 patch tiles
           + 2 * k * cp * 2      # resident weight (counted twice, conservative)
           + 2 * tm * cp * 4     # output tiles (f32 upper bound)
           + 16 * (k + cp) * 4)  # affine rows, per-tile stats, misc
    est = est + est // 2 + (2 << 20)
    return int(min(max(est, 16 << 20), 60 << 20))


def _leaky(x):
    return jnp.where(x > 0, x, LEAKY_SLOPE * x)


# ----------------------------------------------------------------------------
# Kernel A: initial conv  (tiled matmul + LeakyReLU, bf16 out)
# ----------------------------------------------------------------------------
def _conv_leaky_kernel(p_ref, w_ref, o_ref):
    y = jnp.dot(p_ref[...], w_ref[...], preferred_element_type=jnp.float32)
    o_ref[...] = _leaky(y).astype(o_ref.dtype)


def conv_leaky_call(p2d, w2d, *, tm):
    mp, k = p2d.shape
    cp = w2d.shape[1]
    cost = pl.CostEstimate(
        flops=2 * mp * k * cp + 2 * mp * cp,
        transcendentals=0,
        bytes_accessed=mp * k * 2 + k * cp * 2 + mp * cp * 2)
    return pl.pallas_call(
        _conv_leaky_kernel,
        out_shape=jax.ShapeDtypeStruct((mp, cp), jnp.bfloat16),
        grid=(mp // tm,),
        in_specs=[pl.BlockSpec((tm, k), lambda i: (i, 0)),
                  pl.BlockSpec((k, cp), lambda i: (0, 0))],      # resident
        out_specs=pl.BlockSpec((tm, cp), lambda i: (i, 0)),
        compiler_params=pltpu.CompilerParams(
            dimension_semantics=("parallel",),
            vmem_limit_bytes=_vmem_limit_bytes(tm, k, cp)),
        cost_estimate=cost,
    )(p2d, w2d)


# ----------------------------------------------------------------------------
# Kernel B: pyramid conv.  Optional deferred-BN affine + LeakyReLU applied to
# the incoming patches (per-column), raw conv output written in bf16, per-tile
# channel sum / sum-of-squares written as "parallel" partials.
# ----------------------------------------------------------------------------
def _conv_stats_kernel(p_ref, *rest, affine, mask, m_true, tm):
    if affine:
        sc_ref, sh_ref, w_ref, y_ref, s_ref, ss_ref = rest
        p = p_ref[...].astype(jnp.float32) * sc_ref[...] + sh_ref[...]
        p = _leaky(p).astype(jnp.bfloat16)
    else:
        w_ref, y_ref, s_ref, ss_ref = rest
        p = p_ref[...]
    y = jnp.dot(p, w_ref[...], preferred_element_type=jnp.float32)
    yb = y.astype(jnp.bfloat16)
    y_ref[...] = yb

    ys = yb.astype(jnp.float32)
    if mask:  # keep padded patch rows out of the batch statistics
        row0 = pl.program_id(0) * tm
        rid = row0 + lax.broadcasted_iota(jnp.int32, (tm, 1), 0)
        ys = jnp.where(rid < m_true, ys, 0.0)
    cp = ys.shape[-1]
    s_ref[...] = jnp.sum(ys, axis=0, keepdims=True).reshape(1, 1, cp)
    ss_ref[...] = jnp.sum(ys * ys, axis=0, keepdims=True).reshape(1, 1, cp)


def conv_stats_call(p2d, w2d, sc_cols, sh_cols, *, tm, m_true):
    mp, k = p2d.shape
    cp = w2d.shape[1]
    t = mp // tm
    affine = sc_cols is not None
    mask = mp > m_true
    kern = functools.partial(_conv_stats_kernel, affine=affine, mask=mask,
                             m_true=m_true, tm=tm)
    in_specs = [pl.BlockSpec((tm, k), lambda i: (i, 0))]
    args = [p2d]
    if affine:
        in_specs += [pl.BlockSpec((1, k), lambda i: (0, 0)),
                     pl.BlockSpec((1, k), lambda i: (0, 0))]
        args += [sc_cols, sh_cols]
    in_specs += [pl.BlockSpec((k, cp), lambda i: (0, 0))]         # resident
    args += [w2d]
    cost = pl.CostEstimate(
        flops=2 * mp * k * cp + 4 * mp * cp + (4 * mp * k if affine else 0),
        transcendentals=0,
        bytes_accessed=(mp * k * 2 + k * cp * 2 + mp * cp * 2
                        + 2 * t * cp * 4 + (2 * k * 4 if affine else 0)))
    return pl.pallas_call(
        kern,
        out_shape=(jax.ShapeDtypeStruct((mp, cp), jnp.bfloat16),
                   jax.ShapeDtypeStruct((t, 1, cp), jnp.float32),
                   jax.ShapeDtypeStruct((t, 1, cp), jnp.float32)),
        grid=(mp // tm,),
        in_specs=in_specs,
        out_specs=[pl.BlockSpec((tm, cp), lambda i: (i, 0)),
                   pl.BlockSpec((1, 1, cp), lambda i: (i, 0, 0)),
                   pl.BlockSpec((1, 1, cp), lambda i: (i, 0, 0))],
        compiler_params=pltpu.CompilerParams(
            dimension_semantics=("parallel",),     # per-tile partials -> no acc
            vmem_limit_bytes=_vmem_limit_bytes(tm, k, cp)),
        cost_estimate=cost,
    )(*args)


# ----------------------------------------------------------------------------
# Kernel C: head = deferred-BN affine + LeakyReLU on the patches, final-conv
# matmul (feat), classifier centre-tap matmul + sigmoid (clas).
# ----------------------------------------------------------------------------
def _head_kernel(p_ref, sc_ref, sh_ref, w1_ref, w2_ref, feat_ref, clas_ref):
    p = p_ref[...].astype(jnp.float32) * sc_ref[...] + sh_ref[...]
    p = _leaky(p).astype(jnp.bfloat16)
    feat = jnp.dot(p, w1_ref[...], preferred_element_type=jnp.float32)
    feat_ref[...] = feat
    logits = jnp.dot(feat.astype(jnp.bfloat16), w2_ref[...],
                     preferred_element_type=jnp.float32)
    clas_ref[...] = jax.nn.sigmoid(logits)


def head_call(p2d, sc_cols, sh_cols, w1, w2, *, tm):
    mp, k1 = p2d.shape
    cz = w1.shape[1]
    c1 = w2.shape[1]
    cost = pl.CostEstimate(
        flops=2 * mp * k1 * cz + 2 * mp * cz * c1 + 4 * mp * k1,
        transcendentals=mp * c1,
        bytes_accessed=(mp * k1 * 2 + k1 * cz * 2 + cz * c1 * 2
                        + mp * (cz + c1) * 4 + 2 * k1 * 4))
    return pl.pallas_call(
        _head_kernel,
        out_shape=(jax.ShapeDtypeStruct((mp, cz), jnp.float32),
                   jax.ShapeDtypeStruct((mp, c1), jnp.float32)),
        grid=(mp // tm,),
        in_specs=[pl.BlockSpec((tm, k1), lambda i: (i, 0)),
                  pl.BlockSpec((1, k1), lambda i: (0, 0)),
                  pl.BlockSpec((1, k1), lambda i: (0, 0)),
                  pl.BlockSpec((k1, cz), lambda i: (0, 0)),
                  pl.BlockSpec((cz, c1), lambda i: (0, 0))],
        out_specs=[pl.BlockSpec((tm, cz), lambda i: (i, 0)),
                   pl.BlockSpec((tm, c1), lambda i: (i, 0))],
        compiler_params=pltpu.CompilerParams(
            dimension_semantics=("parallel",),
            vmem_limit_bytes=_vmem_limit_bytes(tm, k1, cz + c1)),
        cost_estimate=cost,
    )(p2d, sc_cols, sh_cols, w1, w2)


# ----------------------------------------------------------------------------
# XLA-side glue (patch extraction, weight layout, per-channel BN math)
# ----------------------------------------------------------------------------
def _prep_weight(w_oihw):
    cout, cin, kh, kw = w_oihw.shape
    k = kh * kw * cin
    cp = max(_round_up(cout, LANE), LANE)
    w2d = jnp.transpose(w_oihw, (2, 3, 1, 0)).reshape(k, cout).astype(jnp.float32)
    if cp > cout:
        w2d = jnp.pad(w2d, ((0, 0), (0, cp - cout)))
    return w2d.astype(jnp.bfloat16), cout, cp


def _pad_nhwc(x, pad, pad_val_c=None):
    """Spatial pad.  pad_val_c (per-channel) is used when the producer's BN +
    LeakyReLU is deferred to the consumer: it is the raw value that maps to 0
    after affine+LeakyReLU, so the result matches zero-padding the activated
    tensor."""
    if pad == 0:
        return x
    if pad_val_c is None:
        return jnp.pad(x, ((0, 0), (pad, pad), (pad, pad), (0, 0)))
    n, h, w, c = x.shape
    base = jnp.broadcast_to(pad_val_c.astype(x.dtype).reshape(1, 1, 1, c),
                            (n, h + 2 * pad, w + 2 * pad, c))
    return lax.dynamic_update_slice(base, x, (0, pad, pad, 0))


def _im2col(x, kh, kw, stride):
    """x: (N, H, W, C) already padded -> ((N*Ho*Wo, kh*kw*C), Ho, Wo);
    column order is (kh, kw, C) with C fastest (matches _prep_weight)."""
    n, h, w, c = x.shape
    ho = (h - kh) // stride + 1
    wo = (w - kw) // stride + 1
    cols = []
    for i in range(kh):
        for j in range(kw):
            cols.append(x[:, i:i + stride * ho:stride,
                          j:j + stride * wo:stride, :])
    p = jnp.stack(cols, axis=3)                       # (N, Ho, Wo, kh*kw, C)
    return p.reshape(n * ho * wo, kh * kw * c), ho, wo


def _pad_rows(p2d, mp):
    m = p2d.shape[0]
    if mp > m:
        p2d = jnp.pad(p2d, ((0, mp - m), (0, 0)))
    return p2d


def _bn_affine_from_stats(s_part, ss_part, cout, count, gamma, beta):
    """Global batch-norm affine (scale, shift) from per-tile partial sums, and
    the raw per-channel pad value that maps to 0 after affine + LeakyReLU."""
    ssum = jnp.sum(s_part[:, 0, :cout], axis=0)
    ssq = jnp.sum(ss_part[:, 0, :cout], axis=0)
    mean = ssum / float(count)
    # Single-pass E[y^2] - mean^2 in f32; clamped at 0 to guard cancellation.
    # TODO(synk): shifted/Welford accumulation if |mean| >> std ever matters.
    var = jnp.maximum(ssq / float(count) - mean * mean, 0.0)
    inv = lax.rsqrt(var + BN_EPS)
    scale = gamma.astype(jnp.float32).reshape(-1) * inv
    shift = beta.astype(jnp.float32).reshape(-1) - mean * scale
    safe = jnp.where(jnp.abs(scale) < 1e-12, 1e-12, scale)
    pad_val = -shift / safe
    return scale, shift, pad_val


def _layer_conv(x_nhwc, w_oihw, *, stride, pad, affine, want_stats, tm_cap=None):
    """One conv layer.  `affine` = deferred (scale, shift, pad_val) of the
    producing BN layer (applied in-kernel to the patch columns), or None.
    Returns (y2d_bf16[:Mp,:Cp], Ho, Wo, M, Cout, stats or None)."""
    del tm_cap
    n = x_nhwc.shape[0]
    cout, cin, kh, kw = w_oihw.shape
    w2d, cout, _ = _prep_weight(w_oihw)
    pad_val = None if affine is None else affine[2]
    patches, ho, wo = _im2col(_pad_nhwc(x_nhwc, pad, pad_val), kh, kw, stride)
    m = n * ho * wo
    mp, tm = _pick_tiles(m, patches.shape[1])
    p2d = _pad_rows(patches, mp)
    if affine is None:
        sc_cols = sh_cols = None
    else:
        sc_cols = jnp.tile(affine[0], kh * kw).reshape(1, -1)
        sh_cols = jnp.tile(affine[1], kh * kw).reshape(1, -1)
    if want_stats:
        y, s_part, ss_part = conv_stats_call(p2d, w2d, sc_cols, sh_cols,
                                             tm=tm, m_true=m)
        return y, ho, wo, m, cout, (s_part, ss_part)
    assert affine is None  # only the initial layer uses this path
    y = conv_leaky_call(p2d, w2d, tm=tm)
    return y, ho, wo, m, cout, None


# ----------------------------------------------------------------------------
# Forward pass
# ----------------------------------------------------------------------------
def basic_discriminator_forward(x_nchw, feat_layers, clas_w):
    # TODO(synk): torch.cuda / nn.parallel.data_parallel multi-GPU branch is
    # device placement only (identical math) and is not reproduced.
    # TODO(synk): BatchNorm uses training-mode batch statistics (module
    # default); eval-mode running statistics are not represented.
    n = x_nchw.shape[0]
    x = jnp.transpose(x_nchw, (0, 2, 3, 1)).astype(jnp.bfloat16)  # NCHW -> NHWC

    # ---- initial-conv + LeakyReLU (no BN) -----------------------------------
    l0 = feat_layers[0]
    y, ho, wo, m, cout, _ = _layer_conv(
        x, l0["w"], stride=l0["stride"], pad=l0["pad"],
        affine=None, want_stats=False)
    cur = y[:m, :cout].reshape(n, ho, wo, cout)       # bf16, post-activation
    affine = None   # deferred (scale, shift, pad_val) of the producing BN layer

    # ---- pyramid layers: raw conv + batch stats; BN+LeakyReLU deferred -------
    for layer in feat_layers[1:-1]:
        y, ho, wo, m, cout, (s_part, ss_part) = _layer_conv(
            cur, layer["w"], stride=layer["stride"], pad=layer["pad"],
            affine=affine, want_stats=True)
        affine = _bn_affine_from_stats(s_part, ss_part, cout, m,
                                       layer["gamma"], layer["beta"])
        cur = y[:m, :cout].reshape(n, ho, wo, cout)   # RAW conv output, bf16

    # ---- head: final-conv (4x4,s1,p0 -> 1x1) + classifier (3x3 centre tap) ---
    wf = feat_layers[-1]["w"]                          # (nz, cndf, 4, 4)
    nz = wf.shape[0]
    khf, kwf = wf.shape[2], wf.shape[3]
    w1, _, cz = _prep_weight(wf)
    patches, ho, wo = _im2col(cur, khf, kwf, 1)        # pad=0 -> 1x1 output
    assert ho == 1 and wo == 1
    k1 = patches.shape[1]
    np_rows, tm_h = _pick_tiles(n, k1)
    sc_cols = jnp.tile(affine[0], khf * kwf).reshape(1, k1)
    sh_cols = jnp.tile(affine[1], khf * kwf).reshape(1, k1)
    # classifier Conv2d(nz, 1, 3, 1, 1) on a 1x1 map == its centre tap
    w2 = jnp.zeros((cz, LANE), jnp.float32)
    w2 = w2.at[:nz, 0].set(clas_w[0, :, 1, 1].astype(jnp.float32))
    feat_p, clas_p = head_call(_pad_rows(patches, np_rows), sc_cols, sh_cols,
                               w1, w2.astype(jnp.bfloat16), tm=tm_h)
    feat = feat_p[:n, :nz].reshape(n, nz, 1, 1)        # NCHW (N, nz, 1, 1)
    clas = clas_p[:n, 0]                               # .view(-1,1).squeeze(1)
    return clas, feat


# ----------------------------------------------------------------------------
# Parameter construction (deterministic, mirrors BasicDiscriminator.__init__
# with n_extra_layers = 0)
# ----------------------------------------------------------------------------
def init_params(key, isize, nc, ndf, nz):
    assert isize % 16 == 0, "isize has to be a multiple of 16"
    keys = iter(jax.random.split(key, 32))

    def nrm(shape):
        return (0.02 * jax.random.normal(next(keys), shape)).astype(jnp.float32)

    layers = []
    # initial-conv: Conv2d(nc, ndf, 4, 2, 1, bias=False) + LeakyReLU(0.2)
    layers.append(dict(w=nrm((ndf, nc, 4, 4)), stride=2, pad=1,
                       act="leaky", use_bn=False, gamma=None, beta=None))
    csize, cndf = isize // 2, ndf
    # pyramid: Conv2d(c, 2c, 4, 2, 1) + BatchNorm2d(2c) + LeakyReLU(0.2)
    while csize > 4:
        out_feat = cndf * 2
        layers.append(dict(w=nrm((out_feat, cndf, 4, 4)), stride=2, pad=1,
                           act="leaky", use_bn=True,
                           gamma=1.0 + nrm((out_feat,)),
                           beta=nrm((out_feat,))))
        cndf, csize = out_feat, csize // 2
    # final-conv: Conv2d(cndf, nz, 4, 1, 0, bias=False)
    layers.append(dict(w=nrm((nz, cndf, 4, 4)), stride=1, pad=0,
                       act="none", use_bn=False, gamma=None, beta=None))
    # classifier: Conv2d(nz, 1, 3, 1, 1, bias=False) + Sigmoid
    clas_w = nrm((1, nz, 3, 3))
    return layers, clas_w


# ----------------------------------------------------------------------------
# Pure-JAX f32 reference (lax.conv) for numerical cross-check
# ----------------------------------------------------------------------------
def ref_forward(x, feat_layers, clas_w):
    dn = ("NCHW", "OIHW", "NCHW")

    def conv(h, w, s, p):
        return lax.conv_general_dilated(h, w, (s, s), [(p, p), (p, p)],
                                        dimension_numbers=dn)

    h = x
    for layer in feat_layers:
        h = conv(h, layer["w"], layer["stride"], layer["pad"])
        if layer["use_bn"]:
            mean = jnp.mean(h, axis=(0, 2, 3), keepdims=True)
            var = jnp.mean(jnp.square(h - mean), axis=(0, 2, 3), keepdims=True)
            h = (h - mean) * lax.rsqrt(var + BN_EPS)
            h = h * layer["gamma"].reshape(1, -1, 1, 1) \
                + layer["beta"].reshape(1, -1, 1, 1)
        if layer["act"] == "leaky":
            h = jnp.where(h > 0, h, LEAKY_SLOPE * h)
    feat = h
    c = jax.nn.sigmoid(conv(feat, clas_w, 1, 1))
    return c.reshape(-1), feat


if __name__ == "__main__":
    # opt: isize=32, nc=3, ndf=8, nz=8, ngpu=1 -> small, but exercises the
    # multi-pyramid path (deferred-BN fold + per-channel spatial padding).
    N, nc, isize, ndf, nz = 2, 3, 32, 8, 8
    key = jax.random.PRNGKey(0)
    kx, kp = jax.random.split(key)
    x = jax.random.normal(kx, (N, nc, isize, isize), dtype=jnp.float32)
    feat_layers, clas_w = init_params(kp, isize, nc, ndf, nz)

    fwd = jax.jit(lambda inp: basic_discriminator_forward(inp, feat_layers, clas_w))
    clas, feat = fwd(x)
    jax.block_until_ready((clas, feat))

    assert clas.shape == (N,), clas.shape
    assert feat.shape == (N, nz, 1, 1), feat.shape
    assert bool(jnp.all(jnp.isfinite(clas))) and bool(jnp.all(jnp.isfinite(feat)))
    assert bool(jnp.all((clas > 0.0) & (clas < 1.0)))

    # f32 reference; kernel path uses bf16 inputs/intermediates with f32 MXU
    # accumulation and f32 BN statistics, so the tolerance reflects bf16
    # rounding of inputs/activations (not kernel bugs).
    clas_ref, feat_ref = ref_forward(x, feat_layers, clas_w)
    np.testing.assert_allclose(np.asarray(clas), np.asarray(clas_ref),
                               rtol=5e-2, atol=5e-2)
    np.testing.assert_allclose(np.asarray(feat), np.asarray(feat_ref),
                               rtol=5e-2, atol=5e-2)

    print("KERNEL_OK")
</pallas_src>

<mosaic_0001>
module attributes {stable_mosaic.version = 11 : i64} {
  func.func @_conv_leaky_kernel(%arg0: i32, %arg1: memref<512x48xbf16, #tpu.memory_space<vmem>>, %arg2: memref<48x128xbf16, #tpu.memory_space<vmem>>, %arg3: memref<512x128xbf16, #tpu.memory_space<vmem>>) attributes {dimension_semantics = [#tpu.dimension_semantics<parallel>], iteration_bounds = array<i64: 1>, scalar_prefetch = 0 : i64, scratch_operands = 0 : i64, tpu.core_type = #tpu.core_type<tc>, window_params = [{transform_indices = @transform_0, window_bounds = array<i64: 512, 48>}, {pipeline_mode = #tpu.pipeline_mode<synchronous>, transform_indices = @transform_1, window_bounds = array<i64: 48, 128>}, {transform_indices = @transform_2, window_bounds = array<i64: 512, 128>}]} {
    %c0 = arith.constant 0 : index
    %c0_0 = arith.constant 0 : index
    %0 = vector.load %arg1[%c0, %c0_0] : memref<512x48xbf16, #tpu.memory_space<vmem>>, vector<512x48xbf16>
    %c0_1 = arith.constant 0 : index
    %c0_2 = arith.constant 0 : index
    %1 = vector.load %arg2[%c0_1, %c0_2] : memref<48x128xbf16, #tpu.memory_space<vmem>>, vector<48x128xbf16>
    %cst = arith.constant dense<0.000000e+00> : vector<512x128xf32>
    %2 = tpu.matmul %0, %1, %cst {dimension_numbers = #tpu.dot_dimension_numbers<[1], [0], [0], [1], [0, 0, 1, 1], [], []>} : vector<512x48xbf16>, vector<48x128xbf16>, vector<512x128xf32> -> vector<512x128xf32>
    %cst_3 = arith.constant 0.000000e+00 : f32
    %3 = vector.broadcast %cst_3 : f32 to vector<512x128xf32>
    %4 = arith.cmpf ogt, %2, %3 : vector<512x128xf32>
    %cst_4 = arith.constant 2.000000e-01 : f32
    %5 = vector.broadcast %cst_4 : f32 to vector<512x128xf32>
    %6 = arith.mulf %5, %2 : vector<512x128xf32>
    %7 = arith.select %4, %2, %6 : vector<512x128xi1>, vector<512x128xf32>
    %8 = arith.truncf %7 : vector<512x128xf32> to vector<512x128xbf16>
    %c0_5 = arith.constant 0 : index
    %c0_6 = arith.constant 0 : index
    %9 = vector.load %arg3[%c0_5, %c0_6] : memref<512x128xbf16, #tpu.memory_space<vmem>>, vector<512x128xbf16>
    tpu.vector_store %arg3[%c0_5, %c0_6], %8 {strides = array<i32>} : memref<512x128xbf16, #tpu.memory_space<vmem>>, vector<512x128xbf16>,
    return
  }
  func.func @transform_0(%arg0: i32) -> (i32, i32) {
    %c0_i32 = arith.constant 0 : i32
    %c0_i32_0 = arith.constant 0 : i32
    return %arg0, %c0_i32 : i32, i32
  }
  func.func @transform_1(%arg0: i32) -> (i32, i32) {
    %c0_i32 = arith.constant 0 : i32
    %c0_i32_0 = arith.constant 0 : i32
    %c0_i32_1 = arith.constant 0 : i32
    return %c0_i32, %c0_i32_0 : i32, i32
  }
  func.func @transform_2(%arg0: i32) -> (i32, i32) {
    %c0_i32 = arith.constant 0 : i32
    %c0_i32_0 = arith.constant 0 : i32
    return %arg0, %c0_i32 : i32, i32
  }
}

module attributes {stable_mosaic.version = 11 : i64} {
  func.func @_conv_stats_kernel(%arg0: i32, %arg1: memref<128x128xbf16, #tpu.memory_space<vmem>>, %arg2: memref<128x128xbf16, #tpu.memory_space<vmem>>, %arg3: memref<128x128xbf16, #tpu.memory_space<vmem>>, %arg4: memref<1x1x128xf32, #tpu.memory_space<vmem>>, %arg5: memref<1x1x128xf32, #tpu.memory_space<vmem>>) attributes {dimension_semantics = [#tpu.dimension_semantics<parallel>], iteration_bounds = array<i64: 1>, scalar_prefetch = 0 : i64, scratch_operands = 0 : i64, tpu.core_type = #tpu.core_type<tc>, window_params = [{transform_indices = @transform_0, window_bounds = array<i64: 128, 128>}, {pipeline_mode = #tpu.pipeline_mode<synchronous>, transform_indices = @transform_1, window_bounds = array<i64: 128, 128>}, {transform_indices = @transform_2, window_bounds = array<i64: 128, 128>}, {transform_indices = @transform_3, window_bounds = array<i64: 1, 1, 128>}, {transform_indices = @transform_4, window_bounds = array<i64: 1, 1, 128>}]} {
    %c0 = arith.constant 0 : index
    %c0_0 = arith.constant 0 : index
    %0 = vector.load %arg1[%c0, %c0_0] : memref<128x128xbf16, #tpu.memory_space<vmem>>, vector<128x128xbf16>
    %c0_1 = arith.constant 0 : index
    %c0_2 = arith.constant 0 : index
    %1 = vector.load %arg2[%c0_1, %c0_2] : memref<128x128xbf16, #tpu.memory_space<vmem>>, vector<128x128xbf16>
    %cst = arith.constant dense<0.000000e+00> : vector<128x128xf32>
    %2 = tpu.matmul %0, %1, %cst {dimension_numbers = #tpu.dot_dimension_numbers<[1], [0], [0], [1], [0, 0, 1, 1], [], []>} : vector<128x128xbf16>, vector<128x128xbf16>, vector<128x128xf32> -> vector<128x128xf32>
    %3 = arith.truncf %2 : vector<128x128xf32> to vector<128x128xbf16>
    %c0_3 = arith.constant 0 : index
    %c0_4 = arith.constant 0 : index
    %4 = vector.load %arg3[%c0_3, %c0_4] : memref<128x128xbf16, #tpu.memory_space<vmem>>, vector<128x128xbf16>
    tpu.vector_store %arg3[%c0_3, %c0_4], %3 {strides = array<i32>} : memref<128x128xbf16, #tpu.memory_space<vmem>>, vector<128x128xbf16>,
    %5 = arith.extf %3 : vector<128x128xbf16> to vector<128x128xf32>
    %cst_5 = arith.constant dense<0.000000e+00> : vector<128xf32>
    %6 = vector.multi_reduction <add>, %5, %cst_5 [0] : vector<128x128xf32> to vector<128xf32>
    %7 = vector.shape_cast %6 : vector<128xf32> to vector<1x128xf32>
    %8 = vector.shape_cast %7 : vector<1x128xf32> to vector<1x1x128xf32>
    %c0_6 = arith.constant 0 : index
    %c0_7 = arith.constant 0 : index
    %c0_8 = arith.constant 0 : index
    %9 = vector.load %arg4[%c0_6, %c0_7, %c0_8] : memref<1x1x128xf32, #tpu.memory_space<vmem>>, vector<1x1x128xf32>
    tpu.vector_store %arg4[%c0_6, %c0_7, %c0_8], %8 {strides = array<i32>} : memref<1x1x128xf32, #tpu.memory_space<vmem>>, vector<1x1x128xf32>,
    %10 = arith.mulf %5, %5 : vector<128x128xf32>
    %cst_9 = arith.constant dense<0.000000e+00> : vector<128xf32>
    %11 = vector.multi_reduction <add>, %10, %cst_9 [0] : vector<128x128xf32> to vector<128xf32>
    %12 = vector.shape_cast %11 : vector<128xf32> to vector<1x128xf32>
    %13 = vector.shape_cast %12 : vector<1x128xf32> to vector<1x1x128xf32>
    %c0_10 = arith.constant 0 : index
    %c0_11 = arith.constant 0 : index
    %c0_12 = arith.constant 0 : index
    %14 = vector.load %arg5[%c0_10, %c0_11, %c0_12] : memref<1x1x128xf32, #tpu.memory_space<vmem>>, vector<1x1x128xf32>
    tpu.vector_store %arg5[%c0_10, %c0_11, %c0_12], %13 {strides = array<i32>} : memref<1x1x128xf32, #tpu.memory_space<vmem>>, vector<1x1x128xf32>,
    return
  }
  func.func @transform_0(%arg0: i32) -> (i32, i32) {
    %c0_i32 = arith.constant 0 : i32
    %c0_i32_0 = arith.constant 0 : i32
    return %arg0, %c0_i32 : i32, i32
  }
  func.func @transform_1(%arg0: i32) -> (i32, i32) {
    %c0_i32 = arith.constant 0 : i32
    %c0_i32_0 = arith.constant 0 : i32
    %c0_i32_1 = arith.constant 0 : i32
    return %c0_i32, %c0_i32_0 : i32, i32
  }
  func.func @transform_2(%arg0: i32) -> (i32, i32) {
    %c0_i32 = arith.constant 0 : i32
    %c0_i32_0 = arith.constant 0 : i32
    return %arg0, %c0_i32 : i32, i32
  }
  func.func @transform_3(%arg0: i32) -> (i32, i32, i32) {
    %c0_i32 = arith.constant 0 : i32
    %c0_i32_0 = arith.constant 0 : i32
    %c0_i32_1 = arith.constant 0 : i32
    return %arg0, %c0_i32, %c0_i32_0 : i32, i32, i32
  }
  func.func @transform_4(%arg0: i32) -> (i32, i32, i32) {
    %c0_i32 = arith.constant 0 : i32
    %c0_i32_0 = arith.constant 0 : i32
    %c0_i32_1 = arith.constant 0 : i32
    return %arg0, %c0_i32, %c0_i32_0 : i32, i32, i32
  }
}

module attributes {stable_mosaic.version = 11 : i64} {
  func.func @_conv_stats_kernel(%arg0: i32, %arg1: memref<32x256xbf16, #tpu.memory_space<vmem>>, %arg2: memref<1x256xf32, #tpu.memory_space<vmem>>, %arg3: memref<1x256xf32, #tpu.memory_space<vmem>>, %arg4: memref<256x128xbf16, #tpu.memory_space<vmem>>, %arg5: memref<32x128xbf16, #tpu.memory_space<vmem>>, %arg6: memref<1x1x128xf32, #tpu.memory_space<vmem>>, %arg7: memref<1x1x128xf32, #tpu.memory_space<vmem>>) attributes {dimension_semantics = [#tpu.dimension_semantics<parallel>], iteration_bounds = array<i64: 1>, scalar_prefetch = 0 : i64, scratch_operands = 0 : i64, tpu.core_type = #tpu.core_type<tc>, window_params = [{transform_indices = @transform_0, window_bounds = array<i64: 32, 256>}, {pipeline_mode = #tpu.pipeline_mode<synchronous>, transform_indices = @transform_1, window_bounds = array<i64: 1, 256>}, {pipeline_mode = #tpu.pipeline_mode<synchronous>, transform_indices = @transform_2, window_bounds = array<i64: 1, 256>}, {pipeline_mode = #tpu.pipeline_mode<synchronous>, transform_indices = @transform_3, window_bounds = array<i64: 256, 128>}, {transform_indices = @transform_4, window_bounds = array<i64: 32, 128>}, {transform_indices = @transform_5, window_bounds = array<i64: 1, 1, 128>}, {transform_indices = @transform_6, window_bounds = array<i64: 1, 1, 128>}]} {
    %c0 = arith.constant 0 : index
    %c0_0 = arith.constant 0 : index
    %0 = vector.load %arg1[%c0, %c0_0] : memref<32x256xbf16, #tpu.memory_space<vmem>>, vector<32x256xbf16>
    %1 = arith.extf %0 : vector<32x256xbf16> to vector<32x256xf32>
    %c0_1 = arith.constant 0 : index
    %c0_2 = arith.constant 0 : index
    %2 = vector.load %arg2[%c0_1, %c0_2] : memref<1x256xf32, #tpu.memory_space<vmem>>, vector<1x256xf32>
    %3 = vector.broadcast %2 : vector<1x256xf32> to vector<32x256xf32>
    %4 = arith.mulf %1, %3 : vector<32x256xf32>
    %c0_3 = arith.constant 0 : index
    %c0_4 = arith.constant 0 : index
    %5 = vector.load %arg3[%c0_3, %c0_4] : memref<1x256xf32, #tpu.memory_space<vmem>>, vector<1x256xf32>
    %6 = vector.broadcast %5 : vector<1x256xf32> to vector<32x256xf32>
    %7 = arith.addf %4, %6 : vector<32x256xf32>
    %cst = arith.constant 0.000000e+00 : f32
    %8 = vector.broadcast %cst : f32 to vector<32x256xf32>
    %9 = arith.cmpf ogt, %7, %8 : vector<32x256xf32>
    %cst_5 = arith.constant 2.000000e-01 : f32
    %10 = vector.broadcast %cst_5 : f32 to vector<32x256xf32>
    %11 = arith.mulf %10, %7 : vector<32x256xf32>
    %12 = arith.select %9, %7, %11 : vector<32x256xi1>, vector<32x256xf32>
    %13 = arith.truncf %12 : vector<32x256xf32> to vector<32x256xbf16>
    %c0_6 = arith.constant 0 : index
    %c0_7 = arith.constant 0 : index
    %14 = vector.load %arg4[%c0_6, %c0_7] : memref<256x128xbf16, #tpu.memory_space<vmem>>, vector<256x128xbf16>
    %cst_8 = arith.constant dense<0.000000e+00> : vector<32x128xf32>
    %15 = tpu.matmul %13, %14, %cst_8 {dimension_numbers = #tpu.dot_dimension_numbers<[1], [0], [0], [1], [0, 0, 1, 1], [], []>} : vector<32x256xbf16>, vector<256x128xbf16>, vector<32x128xf32> -> vector<32x128xf32>
    %16 = arith.truncf %15 : vector<32x128xf32> to vector<32x128xbf16>
    %c0_9 = arith.constant 0 : index
    %c0_10 = arith.constant 0 : index
    %17 = vector.load %arg5[%c0_9, %c0_10] : memref<32x128xbf16, #tpu.memory_space<vmem>>, vector<32x128xbf16>
    tpu.vector_store %arg5[%c0_9, %c0_10], %16 {strides = array<i32>} : memref<32x128xbf16, #tpu.memory_space<vmem>>, vector<32x128xbf16>,
    %18 = arith.extf %16 : vector<32x128xbf16> to vector<32x128xf32>
    %cst_11 = arith.constant dense<0.000000e+00> : vector<128xf32>
    %19 = vector.multi_reduction <add>, %18, %cst_11 [0] : vector<32x128xf32> to vector<128xf32>
    %20 = vector.shape_cast %19 : vector<128xf32> to vector<1x128xf32>
    %21 = vector.shape_cast %20 : vector<1x128xf32> to vector<1x1x128xf32>
    %c0_12 = arith.constant 0 : index
    %c0_13 = arith.constant 0 : index
    %c0_14 = arith.constant 0 : index
    %22 = vector.load %arg6[%c0_12, %c0_13, %c0_14] : memref<1x1x128xf32, #tpu.memory_space<vmem>>, vector<1x1x128xf32>
    tpu.vector_store %arg6[%c0_12, %c0_13, %c0_14], %21 {strides = array<i32>} : memref<1x1x128xf32, #tpu.memory_space<vmem>>, vector<1x1x128xf32>,
    %23 = arith.mulf %18, %18 : vector<32x128xf32>
    %cst_15 = arith.constant dense<0.000000e+00> : vector<128xf32>
    %24 = vector.multi_reduction <add>, %23, %cst_15 [0] : vector<32x128xf32> to vector<128xf32>
    %25 = vector.shape_cast %24 : vector<128xf32> to vector<1x128xf32>
    %26 = vector.shape_cast %25 : vector<1x128xf32> to vector<1x1x128xf32>
    %c0_16 = arith.constant 0 : index
    %c0_17 = arith.constant 0 : index
    %c0_18 = arith.constant 0 : index
    %27 = vector.load %arg7[%c0_16, %c0_17, %c0_18] : memref<1x1x128xf32, #tpu.memory_space<vmem>>, vector<1x1x128xf32>
    tpu.vector_store %arg7[%c0_16, %c0_17, %c0_18], %26 {strides = array<i32>} : memref<1x1x128xf32, #tpu.memory_space<vmem>>, vector<1x1x128xf32>,
    return
  }
  func.func @transform_0(%arg0: i32) -> (i32, i32) {
    %c0_i32 = arith.constant 0 : i32
    %c0_i32_0 = arith.constant 0 : i32
    return %arg0, %c0_i32 : i32, i32
  }
  func.func @transform_1(%arg0: i32) -> (i32, i32) {
    %c0_i32 = arith.constant 0 : i32
    %c0_i32_0 = arith.constant 0 : i32
    %c0_i32_1 = arith.constant 0 : i32
    return %c0_i32, %c0_i32_0 : i32, i32
  }
  func.func @transform_2(%arg0: i32) -> (i32, i32) {
    %c0_i32 = arith.constant 0 : i32
    %c0_i32_0 = arith.constant 0 : i32
    %c0_i32_1 = arith.constant 0 : i32
    return %c0_i32, %c0_i32_0 : i32, i32
  }
  func.func @transform_3(%arg0: i32) -> (i32, i32) {
    %c0_i32 = arith.constant 0 : i32
    %c0_i32_0 = arith.constant 0 : i32
    %c0_i32_1 = arith.constant 0 : i32
    return %c0_i32, %c0_i32_0 : i32, i32
  }
  func.func @transform_4(%arg0: i32) -> (i32, i32) {
    %c0_i32 = arith.constant 0 : i32
    %c0_i32_0 = arith.constant 0 : i32
    return %arg0, %c0_i32 : i32, i32
  }
  func.func @transform_5(%arg0: i32) -> (i32, i32, i32) {
    %c0_i32 = arith.constant 0 : i32
    %c0_i32_0 = arith.constant 0 : i32
    %c0_i32_1 = arith.constant 0 : i32
    return %arg0, %c0_i32, %c0_i32_0 : i32, i32, i32
  }
  func.func @transform_6(%arg0: i32) -> (i32, i32, i32) {
    %c0_i32 = arith.constant 0 : i32
    %c0_i32_0 = arith.constant 0 : i32
    %c0_i32_1 = arith.constant 0 : i32
    return %arg0, %c0_i32, %c0_i32_0 : i32, i32, i32
  }
}

module attributes {stable_mosaic.version = 11 : i64} {
  func.func @_head_kernel(%arg0: i32, %arg1: memref<8x512xbf16, #tpu.memory_space<vmem>>, %arg2: memref<1x512xf32, #tpu.memory_space<vmem>>, %arg3: memref<1x512xf32, #tpu.memory_space<vmem>>, %arg4: memref<512x128xbf16, #tpu.memory_space<vmem>>, %arg5: memref<128x128xbf16, #tpu.memory_space<vmem>>, %arg6: memref<8x128xf32, #tpu.memory_space<vmem>>, %arg7: memref<8x128xf32, #tpu.memory_space<vmem>>) attributes {dimension_semantics = [#tpu.dimension_semantics<parallel>], iteration_bounds = array<i64: 1>, scalar_prefetch = 0 : i64, scratch_operands = 0 : i64, tpu.core_type = #tpu.core_type<tc>, window_params = [{transform_indices = @transform_0, window_bounds = array<i64: 8, 512>}, {pipeline_mode = #tpu.pipeline_mode<synchronous>, transform_indices = @transform_1, window_bounds = array<i64: 1, 512>}, {pipeline_mode = #tpu.pipeline_mode<synchronous>, transform_indices = @transform_2, window_bounds = array<i64: 1, 512>}, {pipeline_mode = #tpu.pipeline_mode<synchronous>, transform_indices = @transform_3, window_bounds = array<i64: 512, 128>}, {pipeline_mode = #tpu.pipeline_mode<synchronous>, transform_indices = @transform_4, window_bounds = array<i64: 128, 128>}, {transform_indices = @transform_5, window_bounds = array<i64: 8, 128>}, {transform_indices = @transform_6, window_bounds = array<i64: 8, 128>}]} {
    %c0 = arith.constant 0 : index
    %c0_0 = arith.constant 0 : index
    %0 = vector.load %arg1[%c0, %c0_0] : memref<8x512xbf16, #tpu.memory_space<vmem>>, vector<8x512xbf16>
    %1 = arith.extf %0 : vector<8x512xbf16> to vector<8x512xf32>
    %c0_1 = arith.constant 0 : index
    %c0_2 = arith.constant 0 : index
    %2 = vector.load %arg2[%c0_1, %c0_2] : memref<1x512xf32, #tpu.memory_space<vmem>>, vector<1x512xf32>
    %3 = vector.broadcast %2 : vector<1x512xf32> to vector<8x512xf32>
    %4 = arith.mulf %1, %3 : vector<8x512xf32>
    %c0_3 = arith.constant 0 : index
    %c0_4 = arith.constant 0 : index
    %5 = vector.load %arg3[%c0_3, %c0_4] : memref<1x512xf32, #tpu.memory_space<vmem>>, vector<1x512xf32>
    %6 = vector.broadcast %5 : vector<1x512xf32> to vector<8x512xf32>
    %7 = arith.addf %4, %6 : vector<8x512xf32>
    %cst = arith.constant 0.000000e+00 : f32
    %8 = vector.broadcast %cst : f32 to vector<8x512xf32>
    %9 = arith.cmpf ogt, %7, %8 : vector<8x512xf32>
    %cst_5 = arith.constant 2.000000e-01 : f32
    %10 = vector.broadcast %cst_5 : f32 to vector<8x512xf32>
    %11 = arith.mulf %10, %7 : vector<8x512xf32>
    %12 = arith.select %9, %7, %11 : vector<8x512xi1>, vector<8x512xf32>
    %13 = arith.truncf %12 : vector<8x512xf32> to vector<8x512xbf16>
    %c0_6 = arith.constant 0 : index
    %c0_7 = arith.constant 0 : index
    %14 = vector.load %arg4[%c0_6, %c0_7] : memref<512x128xbf16, #tpu.memory_space<vmem>>, vector<512x128xbf16>
    %cst_8 = arith.constant dense<0.000000e+00> : vector<8x128xf32>
    %15 = tpu.matmul %13, %14, %cst_8 {dimension_numbers = #tpu.dot_dimension_numbers<[1], [0], [0], [1], [0, 0, 1, 1], [], []>} : vector<8x512xbf16>, vector<512x128xbf16>, vector<8x128xf32> -> vector<8x128xf32>
    %c0_9 = arith.constant 0 : index
    %c0_10 = arith.constant 0 : index
    %16 = vector.load %arg6[%c0_9, %c0_10] : memref<8x128xf32, #tpu.memory_space<vmem>>, vector<8x128xf32>
    tpu.vector_store %arg6[%c0_9, %c0_10], %15 {strides = array<i32>} : memref<8x128xf32, #tpu.memory_space<vmem>>, vector<8x128xf32>,
    %17 = arith.truncf %15 : vector<8x128xf32> to vector<8x128xbf16>
    %c0_11 = arith.constant 0 : index
    %c0_12 = arith.constant 0 : index
    %18 = vector.load %arg5[%c0_11, %c0_12] : memref<128x128xbf16, #tpu.memory_space<vmem>>, vector<128x128xbf16>
    %cst_13 = arith.constant dense<0.000000e+00> : vector<8x128xf32>
    %19 = tpu.matmul %17, %18, %cst_13 {dimension_numbers = #tpu.dot_dimension_numbers<[1], [0], [0], [1], [0, 0, 1, 1], [], []>} : vector<8x128xbf16>, vector<128x128xbf16>, vector<8x128xf32> -> vector<8x128xf32>
    %20 = arith.negf %19 : vector<8x128xf32>
    %21 = math.exp %20 : vector<8x128xf32>
    %cst_14 = arith.constant 1.000000e+00 : f32
    %22 = vector.broadcast %cst_14 : f32 to vector<8x128xf32>
    %23 = arith.addf %22, %21 : vector<8x128xf32>
    %24 = arith.divf %22, %23 : vector<8x128xf32>
    %c0_15 = arith.constant 0 : index
    %c0_16 = arith.constant 0 : index
    %25 = vector.load %arg7[%c0_15, %c0_16] : memref<8x128xf32, #tpu.memory_space<vmem>>, vector<8x128xf32>
    tpu.vector_store %arg7[%c0_15, %c0_16], %24 {strides = array<i32>} : memref<8x128xf32, #tpu.memory_space<vmem>>, vector<8x128xf32>,
    return
  }
  func.func @transform_0(%arg0: i32) -> (i32, i32) {
    %c0_i32 = arith.constant 0 : i32
    %c0_i32_0 = arith.constant 0 : i32
    return %arg0, %c0_i32 : i32, i32
  }
  func.func @transform_1(%arg0: i32) -> (i32, i32) {
    %c0_i32 = arith.constant 0 : i32
    %c0_i32_0 = arith.constant 0 : i32
    %c0_i32_1 = arith.constant 0 : i32
    return %c0_i32, %c0_i32_0 : i32, i32
  }
  func.func @transform_2(%arg0: i32) -> (i32, i32) {
    %c0_i32 = arith.constant 0 : i32
    %c0_i32_0 = arith.constant 0 : i32
    %c0_i32_1 = arith.constant 0 : i32
    return %c0_i32, %c0_i32_0 : i32, i32
  }
  func.func @transform_3(%arg0: i32) -> (i32, i32) {
    %c0_i32 = arith.constant 0 : i32
    %c0_i32_0 = arith.constant 0 : i32
    %c0_i32_1 = arith.constant 0 : i32
    return %c0_i32, %c0_i32_0 : i32, i32
  }
  func.func @transform_4(%arg0: i32) -> (i32, i32) {
    %c0_i32 = arith.constant 0 : i32
    %c0_i32_0 = arith.constant 0 : i32
    %c0_i32_1 = arith.constant 0 : i32
    return %c0_i32, %c0_i32_0 : i32, i32
  }
  func.func @transform_5(%arg0: i32) -> (i32, i32) {
    %c0_i32 = arith.constant 0 : i32
    %c0_i32_0 = arith.constant 0 : i32
    return %arg0, %c0_i32 : i32, i32
  }
  func.func @transform_6(%arg0: i32) -> (i32, i32) {
    %c0_i32 = arith.constant 0 : i32
    %c0_i32_0 = arith.constant 0 : i32
    return %arg0, %c0_i32 : i32, i32
  }
}

</mosaic_0001>

<bundles_post_ra>
// kernel: _lambda_.4
= control target key start
LH: loop header
LB: loop body
LE: loop exit
PB: predicated region body
PF: predicated region fallthrough
CT: control target
= control target key end

     0   :  { %vm260_vm0 = vcmask 392192   ;;  %s1951_s1 = inlined_call_operand.vmem [shape: bf16[48,128], index: 1, kind: input, shape index: {}]   ;;  %s1952_s0 = inlined_call_operand.vmem [shape: bf16[512,48], index: 0, kind: input, shape index: {}]   ;;  %s1953_s2 = inlined_call_operand.vmem [shape: bf16[512,128], index: 2, kind: output, shape index: {}]  }
   0x1   :  { %v1659_v0 = vld [vmem:[%s1951_s1 + $0x10] sm:$0xff]   ;;  %v1660_v1 = vld [vmem:[%s1951_s1 + $0x8] sm:$0xff]   ;;  %v1661_v2 = vld [vmem:[%s1951_s1] sm:$0xff]  }
   0x2   :  { %1583 = vmatprep.subr.bf16.mxu0 %v1659_v0  ;;  %1653 = vmatprep.subr.bf16.mxu1 %v1659_v0  ;;  %v1662_v3 = vld [vmem:[%s1952_s0] sm:$0xff]   ;;  %v1664_v5 = vld [vmem:[%s1952_s0 + $0x8] sm:$0xff]   ;;  %v1666_v7 = vld [vmem:[%s1952_s0 + $0x10] sm:$0xff]  }
   0x3   :  { %1584 = vmatpush3.bf16.msra.mxu0 %v1659_v0  ;;  %1656 = vmatpush3.bf16.msra.mxu1 %v1659_v0  ;;  %v1663_v4 = vld [vmem:[%s1952_s0 + $0x80] sm:$0xff]   ;;  %v1665_v6 = vld [vmem:[%s1952_s0 + $0x88] sm:$0xff]   ;;  %v1667_v8 = vld [vmem:[%s1952_s0 + $0x90] sm:$0xff]  }
   0x4   :  { %1585 = vmatprep.subr.bf16.mxu0 %v1660_v1  ;;  %1654 = vmatprep.subr.bf16.mxu1 %v1660_v1  ;;  %v1668_v9 = vld [vmem:[%s1952_s0 + $0x18] sm:$0xff]   ;;  %v1670_v11 = vld [vmem:[%s1952_s0 + $0x20] sm:$0xff]   ;;  %v1672_v13 = vld [vmem:[%s1952_s0 + $0x28] sm:$0xff]  }
   0x5   :  { %1589 = vmatprep.mubr.msk.bf16.mxu0 %vm260_vm0, %v1662_v3  ;;  %1621 = vmatprep.mubr.msk.bf16.mxu1 %vm260_vm0, %v1663_v4  ;;  %v1669_v10 = vld [vmem:[%s1952_s0 + $0x98] sm:$0xff]   ;;  %v1671_v12 = vld [vmem:[%s1952_s0 + $0xa0] sm:$0xff]   ;;  %v1673_v14 = vld [vmem:[%s1952_s0 + $0xa8] sm:$0xff]  }
   0x6   :  { %v1674_v15 = vld [vmem:[%s1952_s0 + $0x30] sm:$0xff]   ;;  %v1676_v17 = vld [vmem:[%s1952_s0 + $0x38] sm:$0xff]   ;;  %v1678_v19 = vld [vmem:[%s1952_s0 + $0x40] sm:$0xff]  }
   0x7   :  { %1586 = vmatpush3.bf16.msra.mxu0 %v1660_v1  ;;  %1657 = vmatpush3.bf16.msra.mxu1 %v1660_v1  ;;  %v1675_v16 = vld [vmem:[%s1952_s0 + $0xb0] sm:$0xff]   ;;  %v1677_v18 = vld [vmem:[%s1952_s0 + $0xb8] sm:$0xff]   ;;  %v1679_v20 = vld [vmem:[%s1952_s0 + $0xc0] sm:$0xff]  }
   0x8   :  { %1587 = vmatprep.subr.bf16.mxu0 %v1661_v2  ;;  %1655 = vmatprep.subr.bf16.mxu1 %v1661_v2  ;;  %v1680_v21 = vld [vmem:[%s1952_s0 + $0x48] sm:$0xff]   ;;  %v1682_v23 = vld [vmem:[%s1952_s0 + $0x50] sm:$0xff]   ;;  %v1684_v25 = vld [vmem:[%s1952_s0 + $0x58] sm:$0xff]  }
   0x9   :  { %v1681_v22 = vld [vmem:[%s1952_s0 + $0xc8] sm:$0xff]   ;;  %v1683_v24 = vld [vmem:[%s1952_s0 + $0xd0] sm:$0xff]   ;;  %v1685_v26 = vld [vmem:[%s1952_s0 + $0xd8] sm:$0xff]  }
   0xa   :  { %v1686_v27 = vld [vmem:[%s1952_s0 + $0x60] sm:$0xff]   ;;  %v1688_v29 = vld [vmem:[%s1952_s0 + $0x68] sm:$0xff]   ;;  %v1690_v31 = vld [vmem:[%s1952_s0 + $0x70] sm:$0xff]  }
   0xb   :  { %1588 = vmatpush3.bf16.msra.mxu0 %v1661_v2  ;;  %1658 = vmatpush3.bf16.msra.mxu1 %v1661_v2  ;;  %v1687_v28 = vld [vmem:[%s1952_s0 + $0xe0] sm:$0xff]   ;;  %v1689_v30 = vld [vmem:[%s1952_s0 + $0xe8] sm:$0xff]   ;;  %v1691_v32 = vld [vmem:[%s1952_s0 + $0xf0] sm:$0xff]  }
   0xc   :  { %v1692_v33 = vld [vmem:[%s1952_s0 + $0x78] sm:$0xff]  }
   0xd   :  { %v1693_v34 = vld [vmem:[%s1952_s0 + $0xf8] sm:$0xff]  }
   0xe   :  { %1590 = vmatmul.mubr.msk.bf16.vlgmr.msra.gmra.mxu0 %vm260_vm0, %v1664_v5  ;;  %1622 = vmatmul.mubr.msk.bf16.vlgmr.msra.gmra.mxu1 %vm260_vm0, %v1665_v6 }
   0xf   :  { %1593 = vmatprep.mubr.msk.bf16.mxu0 %vm260_vm0, %v1666_v7  ;;  %1625 = vmatprep.mubr.msk.bf16.mxu1 %vm260_vm0, %v1667_v8 }
  0x16   :  { %1594 = vmatmul.mubr.msk.bf16.gmra.mxu0 %vm260_vm0, %v1668_v9  ;;  %1626 = vmatmul.mubr.msk.bf16.gmra.mxu1 %vm260_vm0, %v1669_v10 }
  0x17   :  { %1597 = vmatprep.mubr.msk.bf16.mxu0 %vm260_vm0, %v1670_v11  ;;  %1629 = vmatprep.mubr.msk.bf16.mxu1 %vm260_vm0, %v1671_v12 }
  0x1e   :  { %1598 = vmatmul.mubr.msk.bf16.gmra.mxu0 %vm260_vm0, %v1672_v13  ;;  %1630 = vmatmul.mubr.msk.bf16.gmra.mxu1 %vm260_vm0, %v1673_v14 }
  0x1f   :  { %1601 = vmatprep.mubr.msk.bf16.mxu0 %vm260_vm0, %v1674_v15  ;;  %1633 = vmatprep.mubr.msk.bf16.mxu1 %vm260_vm0, %v1675_v16 }
  0x26   :  { %1602 = vmatmul.mubr.msk.bf16.gmra.mxu0 %vm260_vm0, %v1676_v17  ;;  %1634 = vmatmul.mubr.msk.bf16.gmra.mxu1 %vm260_vm0, %v1677_v18 }
  0x27   :  { %1605 = vmatprep.mubr.msk.bf16.mxu0 %vm260_vm0, %v1678_v19  ;;  %1637 = vmatprep.mubr.msk.bf16.mxu1 %vm260_vm0, %v1679_v20 }
  0x2e   :  { %1606 = vmatmul.mubr.msk.bf16.gmra.mxu0 %vm260_vm0, %v1680_v21  ;;  %1638 = vmatmul.mubr.msk.bf16.gmra.mxu1 %vm260_vm0, %v1681_v22 }
  0x2f   :  { %1609 = vmatprep.mubr.msk.bf16.mxu0 %vm260_vm0, %v1682_v23  ;;  %1641 = vmatprep.mubr.msk.bf16.mxu1 %vm260_vm0, %v1683_v24 }
  0x36   :  { %1610 = vmatmul.mubr.msk.bf16.gmra.mxu0 %vm260_vm0, %v1684_v25  ;;  %1642 = vmatmul.mubr.msk.bf16.gmra.mxu1 %vm260_vm0, %v1685_v26 }
  0x37   :  { %1613 = vmatprep.mubr.msk.bf16.mxu0 %vm260_vm0, %v1686_v27  ;;  %1645 = vmatprep.mubr.msk.bf16.mxu1 %vm260_vm0, %v1687_v28 }
  0x3e   :  { %1614 = vmatmul.mubr.msk.bf16.gmra.mxu0 %vm260_vm0, %v1688_v29  ;;  %1646 = vmatmul.mubr.msk.bf16.gmra.mxu1 %vm260_vm0, %v1689_v30 }
  0x3f   :  { %1617 = vmatprep.mubr.msk.bf16.mxu0 %vm260_vm0, %v1690_v31  ;;  %1649 = vmatprep.mubr.msk.bf16.mxu1 %vm260_vm0, %v1691_v32 }
  0x46   :  { %1618 = vmatmul.mubr.msk.bf16.gmra.mxu0 %vm260_vm0, %v1692_v33  ;;  %1650 = vmatmul.mubr.msk.bf16.gmra.mxu1 %vm260_vm0, %v1693_v34 }
  0xce   :  { %v1591_v35 = vpop.f32.mrf.mxu0  ;;  %v1623_v36 = vpop.f32.mrf.mxu1 }
  0xcf   :  { %vm648_vm1 = vcmp.gt.f32.partialorder %v1591_v35, 0.0  ;;  %v712_v37 = vmul.f32 0.2, %v1591_v35  ;;  %v744_v38 = vmul.f32 0.2, %v1623_v36  ;;  %vm680_vm2 = vcmp.gt.f32.partialorder %v1623_v36, 0.0 }
  0xd0   :  { %v391_v39 = vpop.f32.mrf.mxu0  ;;  %v519_v40 = vpop.f32.mrf.mxu1 }
  0xd1   :  { %v776_v41 = vsel %vm648_vm1, %v1591_v35, %v712_v37  ;;  %v710_v42 = vmul.f32 0.2, %v391_v39  ;;  %vm646_vm3 = vcmp.gt.f32.partialorder %v391_v39, 0.0  ;;  %v808_v46 = vsel %vm680_vm2, %v1623_v36, %v744_v38 }
  0xd2   :  { %v1592_v43 = vpop.f32.mrf.mxu0  ;;  %v1624_v44 = vpop.f32.mrf.mxu1  ;;  %vm678_vm6 = vcmp.gt.f32.partialorder %v519_v40, 0.0  ;;  %v742_v47 = vmul.f32 0.2, %v519_v40 }
  0xd3   :  { %vm649_vm4 = vcmp.gt.f32.partialorder %v1592_v43, 0.0  ;;  %v713_v45 = vmul.f32 0.2, %v1592_v43  ;;  %vm681_vm5 = vcmp.gt.f32.partialorder %v1624_v44, 0.0  ;;  %v745_v48 = vmul.f32 0.2, %v1624_v44 }
  0xd4   :  { %v394_v49 = vpop.f32.mrf.mxu0  ;;  %v522_v50 = vpop.f32.mrf.mxu1  ;;  %v774_v53 = vsel %vm646_vm3, %v391_v39, %v710_v42  ;;  %v806_v62 = vsel %vm678_vm6, %v519_v40, %v742_v47 }
  0xd5   :  { %v777_v51 = vsel %vm649_vm4, %v1592_v43, %v713_v45  ;;  %vm647_vm7 = vcmp.gt.f32.partialorder %v394_v49, 0.0  ;;  %v711_v52 = vmul.f32 0.2, %v394_v49  ;;  %vm679_vm8 = vcmp.gt.f32.partialorder %v522_v50, 0.0 }
  0xd6   :  { %v1365_v54 = vpack.c.bf16 %v777_v51, %v776_v41  ;;  %v809_v55 = vsel %vm681_vm5, %v1624_v44, %v745_v48  ;;  %v743_v56 = vmul.f32 0.2, %v522_v50  ;;  %v1595_v57 = vpop.f32.mrf.mxu0  ;;  %v1627_v58 = vpop.f32.mrf.mxu1 }
  0xd7   :  { %v1445_v59 = vpack.c.bf16 %v809_v55, %v808_v46  ;;  %v775_v60 = vsel %vm647_vm7, %v394_v49, %v711_v52  ;;  %vm652_vm9 = vcmp.gt.f32.partialorder %v1595_v57, 0.0  ;;  %v716_v61 = vmul.f32 0.2, %v1595_v57 }
  0xd8   :  { %1517 = vst [vmem:[%s1953_s2 + $0x8] sm:$0xff] %v1365_v54   ;;  %v1360_v63 = vpack.c.bf16 %v775_v60, %v774_v53  ;;  %v807_v0 = vsel %vm679_vm8, %v522_v50, %v743_v56  ;;  %v748_v1 = vmul.f32 0.2, %v1627_v58  ;;  %v407_v2 = vpop.f32.mrf.mxu0  ;;  %v535_v3 = vpop.f32.mrf.mxu1  ;;  %vm684_vm10 = vcmp.gt.f32.partialorder %v1627_v58, 0.0 }
  0xd9   :  { %1533 = vst [vmem:[%s1953_s2 + $0x88] sm:$0xff] %v1445_v59   ;;  %v1440_v4 = vpack.c.bf16 %v807_v0, %v806_v62  ;;  %v780_v5 = vsel %vm652_vm9, %v1595_v57, %v716_v61  ;;  %v714_v6 = vmul.f32 0.2, %v407_v2  ;;  %vm650_vm11 = vcmp.gt.f32.partialorder %v407_v2, 0.0 }
  0xda   :  { %1361 = vst [vmem:[%s1953_s2] sm:$0xff] %v1360_v63   ;;  %v1596_v7 = vpop.f32.mrf.mxu0  ;;  %v1628_v8 = vpop.f32.mrf.mxu1  ;;  %v812_v10 = vsel %vm684_vm10, %v1627_v58, %v748_v1  ;;  %vm682_vm14 = vcmp.gt.f32.partialorder %v535_v3, 0.0  ;;  %v746_v11 = vmul.f32 0.2, %v535_v3 }
  0xdb   :  { %1532 = vst [vmem:[%s1953_s2 + $0x80] sm:$0xff] %v1440_v4   ;;  %vm653_vm12 = vcmp.gt.f32.partialorder %v1596_v7, 0.0  ;;  %v717_v9 = vmul.f32 0.2, %v1596_v7  ;;  %vm685_vm13 = vcmp.gt.f32.partialorder %v1628_v8, 0.0  ;;  %v778_v17 = vsel %vm650_vm11, %v407_v2, %v714_v6 }
  0xdc   :  { %v749_v12 = vmul.f32 0.2, %v1628_v8  ;;  %v410_v13 = vpop.f32.mrf.mxu0  ;;  %v538_v14 = vpop.f32.mrf.mxu1  ;;  %v810_v26 = vsel %vm682_vm14, %v535_v3, %v746_v11 }
  0xdd   :  { %v781_v15 = vsel %vm653_vm12, %v1596_v7, %v717_v9  ;;  %vm651_vm15 = vcmp.gt.f32.partialorder %v410_v13, 0.0  ;;  %v715_v16 = vmul.f32 0.2, %v410_v13  ;;  %vm683_vm0 = vcmp.gt.f32.partialorder %v538_v14, 0.0 }
  0xde   :  { %v1375_v18 = vpack.c.bf16 %v781_v15, %v780_v5  ;;  %v813_v19 = vsel %vm685_vm13, %v1628_v8, %v749_v12  ;;  %v747_v20 = vmul.f32 0.2, %v538_v14  ;;  %v1599_v21 = vpop.f32.mrf.mxu0  ;;  %v1631_v22 = vpop.f32.mrf.mxu1 }
  0xdf   :  { %v1455_v23 = vpack.c.bf16 %v813_v19, %v812_v10  ;;  %v779_v24 = vsel %vm651_vm15, %v410_v13, %v715_v16  ;;  %vm656_vm1 = vcmp.gt.f32.partialorder %v1599_v21, 0.0  ;;  %v720_v25 = vmul.f32 0.2, %v1599_v21 }
  0xe0   :  { %1519 = vst [vmem:[%s1953_s2 + $0x18] sm:$0xff] %v1375_v18   ;;  %v1370_v27 = vpack.c.bf16 %v779_v24, %v778_v17  ;;  %v811_v28 = vsel %vm683_vm0, %v538_v14, %v747_v20  ;;  %v752_v29 = vmul.f32 0.2, %v1631_v22  ;;  %v423_v30 = vpop.f32.mrf.mxu0  ;;  %v551_v31 = vpop.f32.mrf.mxu1  ;;  %vm688_vm2 = vcmp.gt.f32.partialorder %v1631_v22, 0.0 }
  0xe1   :  { %1535 = vst [vmem:[%s1953_s2 + $0x98] sm:$0xff] %v1455_v23   ;;  %v1450_v32 = vpack.c.bf16 %v811_v28, %v810_v26  ;;  %v784_v33 = vsel %vm656_vm1, %v1599_v21, %v720_v25  ;;  %v718_v34 = vmul.f32 0.2, %v423_v30  ;;  %vm654_vm3 = vcmp.gt.f32.partialorder %v423_v30, 0.0 }
  0xe2   :  { %1518 = vst [vmem:[%s1953_s2 + $0x10] sm:$0xff] %v1370_v27   ;;  %v1600_v35 = vpop.f32.mrf.mxu0  ;;  %v1632_v36 = vpop.f32.mrf.mxu1  ;;  %v816_v38 = vsel %vm688_vm2, %v1631_v22, %v752_v29  ;;  %vm686_vm6 = vcmp.gt.f32.partialorder %v551_v31, 0.0  ;;  %v750_v39 = vmul.f32 0.2, %v551_v31 }
  0xe3   :  { %1534 = vst [vmem:[%s1953_s2 + $0x90] sm:$0xff] %v1450_v32   ;;  %vm657_vm4 = vcmp.gt.f32.partialorder %v1600_v35, 0.0  ;;  %v721_v37 = vmul.f32 0.2, %v1600_v35  ;;  %vm689_vm5 = vcmp.gt.f32.partialorder %v1632_v36, 0.0  ;;  %v782_v45 = vsel %vm654_vm3, %v423_v30, %v718_v34 }
  0xe4   :  { %v753_v40 = vmul.f32 0.2, %v1632_v36  ;;  %v426_v41 = vpop.f32.mrf.mxu0  ;;  %v554_v42 = vpop.f32.mrf.mxu1  ;;  %v814_v54 = vsel %vm686_vm6, %v551_v31, %v750_v39 }
  0xe5   :  { %v785_v43 = vsel %vm657_vm4, %v1600_v35, %v721_v37  ;;  %vm655_vm7 = vcmp.gt.f32.partialorder %v426_v41, 0.0  ;;  %v719_v44 = vmul.f32 0.2, %v426_v41  ;;  %vm687_vm8 = vcmp.gt.f32.partialorder %v554_v42, 0.0 }
  0xe6   :  { %v1385_v46 = vpack.c.bf16 %v785_v43, %v784_v33  ;;  %v817_v47 = vsel %vm689_vm5, %v1632_v36, %v753_v40  ;;  %v751_v48 = vmul.f32 0.2, %v554_v42  ;;  %v1603_v49 = vpop.f32.mrf.mxu0  ;;  %v1635_v50 = vpop.f32.mrf.mxu1 }
  0xe7   :  { %v1465_v51 = vpack.c.bf16 %v817_v47, %v816_v38  ;;  %v783_v52 = vsel %vm655_vm7, %v426_v41, %v719_v44  ;;  %vm660_vm9 = vcmp.gt.f32.partialorder %v1603_v49, 0.0  ;;  %v724_v53 = vmul.f32 0.2, %v1603_v49 }
  0xe8   :  { %1521 = vst [vmem:[%s1953_s2 + $0x28] sm:$0xff] %v1385_v46   ;;  %v1380_v55 = vpack.c.bf16 %v783_v52, %v782_v45  ;;  %v815_v56 = vsel %vm687_vm8, %v554_v42, %v751_v48  ;;  %v756_v57 = vmul.f32 0.2, %v1635_v50  ;;  %v439_v58 = vpop.f32.mrf.mxu0  ;;  %v567_v59 = vpop.f32.mrf.mxu1  ;;  %vm692_vm10 = vcmp.gt.f32.partialorder %v1635_v50, 0.0 }
  0xe9   :  { %1537 = vst [vmem:[%s1953_s2 + $0xa8] sm:$0xff] %v1465_v51   ;;  %v1460_v60 = vpack.c.bf16 %v815_v56, %v814_v54  ;;  %v788_v61 = vsel %vm660_vm9, %v1603_v49, %v724_v53  ;;  %v722_v62 = vmul.f32 0.2, %v439_v58  ;;  %vm658_vm11 = vcmp.gt.f32.partialorder %v439_v58, 0.0 }
  0xea   :  { %1520 = vst [vmem:[%s1953_s2 + $0x20] sm:$0xff] %v1380_v55   ;;  %v1604_v63 = vpop.f32.mrf.mxu0  ;;  %v1636_v0 = vpop.f32.mrf.mxu1  ;;  %v820_v2 = vsel %vm692_vm10, %v1635_v50, %v756_v57  ;;  %vm690_vm14 = vcmp.gt.f32.partialorder %v567_v59, 0.0  ;;  %v754_v3 = vmul.f32 0.2, %v567_v59 }
  0xeb   :  { %1536 = vst [vmem:[%s1953_s2 + $0xa0] sm:$0xff] %v1460_v60   ;;  %vm661_vm12 = vcmp.gt.f32.partialorder %v1604_v63, 0.0  ;;  %v725_v1 = vmul.f32 0.2, %v1604_v63  ;;  %vm693_vm13 = vcmp.gt.f32.partialorder %v1636_v0, 0.0  ;;  %v786_v9 = vsel %vm658_vm11, %v439_v58, %v722_v62 }
  0xec   :  { %v757_v4 = vmul.f32 0.2, %v1636_v0  ;;  %v442_v5 = vpop.f32.mrf.mxu0  ;;  %v570_v6 = vpop.f32.mrf.mxu1  ;;  %v818_v18 = vsel %vm690_vm14, %v567_v59, %v754_v3 }
  0xed   :  { %v789_v7 = vsel %vm661_vm12, %v1604_v63, %v725_v1  ;;  %vm659_vm15 = vcmp.gt.f32.partialorder %v442_v5, 0.0  ;;  %v723_v8 = vmul.f32 0.2, %v442_v5  ;;  %vm691_vm0 = vcmp.gt.f32.partialorder %v570_v6, 0.0 }
  0xee   :  { %v1395_v10 = vpack.c.bf16 %v789_v7, %v788_v61  ;;  %v821_v11 = vsel %vm693_vm13, %v1636_v0, %v757_v4  ;;  %v755_v12 = vmul.f32 0.2, %v570_v6  ;;  %v1607_v13 = vpop.f32.mrf.mxu0  ;;  %v1639_v14 = vpop.f32.mrf.mxu1 }
  0xef   :  { %v1475_v15 = vpack.c.bf16 %v821_v11, %v820_v2  ;;  %v787_v16 = vsel %vm659_vm15, %v442_v5, %v723_v8  ;;  %vm664_vm1 = vcmp.gt.f32.partialorder %v1607_v13, 0.0  ;;  %v728_v17 = vmul.f32 0.2, %v1607_v13 }
  0xf0   :  { %1523 = vst [vmem:[%s1953_s2 + $0x38] sm:$0xff] %v1395_v10   ;;  %v1390_v19 = vpack.c.bf16 %v787_v16, %v786_v9  ;;  %v819_v20 = vsel %vm691_vm0, %v570_v6, %v755_v12  ;;  %v760_v21 = vmul.f32 0.2, %v1639_v14  ;;  %v455_v22 = vpop.f32.mrf.mxu0  ;;  %v583_v23 = vpop.f32.mrf.mxu1  ;;  %vm696_vm2 = vcmp.gt.f32.partialorder %v1639_v14, 0.0 }
  0xf1   :  { %1539 = vst [vmem:[%s1953_s2 + $0xb8] sm:$0xff] %v1475_v15   ;;  %v1470_v24 = vpack.c.bf16 %v819_v20, %v818_v18  ;;  %v792_v25 = vsel %vm664_vm1, %v1607_v13, %v728_v17  ;;  %v726_v26 = vmul.f32 0.2, %v455_v22  ;;  %vm662_vm3 = vcmp.gt.f32.partialorder %v455_v22, 0.0 }
  0xf2   :  { %1522 = vst [vmem:[%s1953_s2 + $0x30] sm:$0xff] %v1390_v19   ;;  %v1608_v27 = vpop.f32.mrf.mxu0  ;;  %v1640_v28 = vpop.f32.mrf.mxu1  ;;  %v824_v30 = vsel %vm696_vm2, %v1639_v14, %v760_v21  ;;  %vm694_vm6 = vcmp.gt.f32.partialorder %v583_v23, 0.0  ;;  %v758_v31 = vmul.f32 0.2, %v583_v23 }
  0xf3   :  { %1538 = vst [vmem:[%s1953_s2 + $0xb0] sm:$0xff] %v1470_v24   ;;  %vm665_vm4 = vcmp.gt.f32.partialorder %v1608_v27, 0.0  ;;  %v729_v29 = vmul.f32 0.2, %v1608_v27  ;;  %vm697_vm5 = vcmp.gt.f32.partialorder %v1640_v28, 0.0  ;;  %v790_v37 = vsel %vm662_vm3, %v455_v22, %v726_v26 }
  0xf4   :  { %v761_v32 = vmul.f32 0.2, %v1640_v28  ;;  %v458_v33 = vpop.f32.mrf.mxu0  ;;  %v586_v34 = vpop.f32.mrf.mxu1  ;;  %v822_v46 = vsel %vm694_vm6, %v583_v23, %v758_v31 }
  0xf5   :  { %v793_v35 = vsel %vm665_vm4, %v1608_v27, %v729_v29  ;;  %vm663_vm7 = vcmp.gt.f32.partialorder %v458_v33, 0.0  ;;  %v727_v36 = vmul.f32 0.2, %v458_v33  ;;  %vm695_vm8 = vcmp.gt.f32.partialorder %v586_v34, 0.0 }
  0xf6   :  { %v1405_v38 = vpack.c.bf16 %v793_v35, %v792_v25  ;;  %v825_v39 = vsel %vm697_vm5, %v1640_v28, %v761_v32  ;;  %v759_v40 = vmul.f32 0.2, %v586_v34  ;;  %v1611_v41 = vpop.f32.mrf.mxu0  ;;  %v1643_v42 = vpop.f32.mrf.mxu1 }
  0xf7   :  { %v1485_v43 = vpack.c.bf16 %v825_v39, %v824_v30  ;;  %v791_v44 = vsel %vm663_vm7, %v458_v33, %v727_v36  ;;  %vm668_vm9 = vcmp.gt.f32.partialorder %v1611_v41, 0.0  ;;  %v732_v45 = vmul.f32 0.2, %v1611_v41 }
  0xf8   :  { %1525 = vst [vmem:[%s1953_s2 + $0x48] sm:$0xff] %v1405_v38   ;;  %v1400_v47 = vpack.c.bf16 %v791_v44, %v790_v37  ;;  %v823_v48 = vsel %vm695_vm8, %v586_v34, %v759_v40  ;;  %v764_v49 = vmul.f32 0.2, %v1643_v42  ;;  %v471_v50 = vpop.f32.mrf.mxu0  ;;  %v599_v51 = vpop.f32.mrf.mxu1  ;;  %vm700_vm10 = vcmp.gt.f32.partialorder %v1643_v42, 0.0 }
  0xf9   :  { %1541 = vst [vmem:[%s1953_s2 + $0xc8] sm:$0xff] %v1485_v43   ;;  %v1480_v52 = vpack.c.bf16 %v823_v48, %v822_v46  ;;  %v796_v53 = vsel %vm668_vm9, %v1611_v41, %v732_v45  ;;  %v730_v54 = vmul.f32 0.2, %v471_v50  ;;  %vm666_vm11 = vcmp.gt.f32.partialorder %v471_v50, 0.0 }
  0xfa   :  { %1524 = vst [vmem:[%s1953_s2 + $0x40] sm:$0xff] %v1400_v47   ;;  %v1612_v55 = vpop.f32.mrf.mxu0  ;;  %v1644_v56 = vpop.f32.mrf.mxu1  ;;  %v828_v58 = vsel %vm700_vm10, %v1643_v42, %v764_v49  ;;  %vm698_vm14 = vcmp.gt.f32.partialorder %v599_v51, 0.0  ;;  %v762_v59 = vmul.f32 0.2, %v599_v51 }
  0xfb   :  { %1540 = vst [vmem:[%s1953_s2 + $0xc0] sm:$0xff] %v1480_v52   ;;  %vm669_vm12 = vcmp.gt.f32.partialorder %v1612_v55, 0.0  ;;  %v733_v57 = vmul.f32 0.2, %v1612_v55  ;;  %vm701_vm13 = vcmp.gt.f32.partialorder %v1644_v56, 0.0  ;;  %v794_v1 = vsel %vm666_vm11, %v471_v50, %v730_v54 }
  0xfc   :  { %v765_v60 = vmul.f32 0.2, %v1644_v56  ;;  %v474_v61 = vpop.f32.mrf.mxu0  ;;  %v602_v62 = vpop.f32.mrf.mxu1  ;;  %v826_v10 = vsel %vm698_vm14, %v599_v51, %v762_v59 }
  0xfd   :  { %v797_v63 = vsel %vm669_vm12, %v1612_v55, %v733_v57  ;;  %vm667_vm15 = vcmp.gt.f32.partialorder %v474_v61, 0.0  ;;  %v731_v0 = vmul.f32 0.2, %v474_v61  ;;  %vm699_vm0 = vcmp.gt.f32.partialorder %v602_v62, 0.0 }
  0xfe   :  { %v1415_v2 = vpack.c.bf16 %v797_v63, %v796_v53  ;;  %v829_v3 = vsel %vm701_vm13, %v1644_v56, %v765_v60  ;;  %v763_v4 = vmul.f32 0.2, %v602_v62  ;;  %v1615_v5 = vpop.f32.mrf.mxu0  ;;  %v1647_v6 = vpop.f32.mrf.mxu1 }
  0xff   :  { %v1495_v7 = vpack.c.bf16 %v829_v3, %v828_v58  ;;  %v795_v8 = vsel %vm667_vm15, %v474_v61, %v731_v0  ;;  %vm672_vm1 = vcmp.gt.f32.partialorder %v1615_v5, 0.0  ;;  %v736_v9 = vmul.f32 0.2, %v1615_v5 }
 0x100   :  { %1527 = vst [vmem:[%s1953_s2 + $0x58] sm:$0xff] %v1415_v2   ;;  %v1410_v11 = vpack.c.bf16 %v795_v8, %v794_v1  ;;  %v827_v12 = vsel %vm699_vm0, %v602_v62, %v763_v4  ;;  %v768_v13 = vmul.f32 0.2, %v1647_v6  ;;  %v487_v14 = vpop.f32.mrf.mxu0  ;;  %v615_v15 = vpop.f32.mrf.mxu1  ;;  %vm704_vm2 = vcmp.gt.f32.partialorder %v1647_v6, 0.0 }
 0x101   :  { %1543 = vst [vmem:[%s1953_s2 + $0xd8] sm:$0xff] %v1495_v7   ;;  %v1490_v16 = vpack.c.bf16 %v827_v12, %v826_v10  ;;  %v800_v17 = vsel %vm672_vm1, %v1615_v5, %v736_v9  ;;  %v734_v18 = vmul.f32 0.2, %v487_v14  ;;  %vm670_vm3 = vcmp.gt.f32.partialorder %v487_v14, 0.0 }
 0x102   :  { %1526 = vst [vmem:[%s1953_s2 + $0x50] sm:$0xff] %v1410_v11   ;;  %v1616_v19 = vpop.f32.mrf.mxu0  ;;  %v1648_v20 = vpop.f32.mrf.mxu1  ;;  %v832_v22 = vsel %vm704_vm2, %v1647_v6, %v768_v13  ;;  %vm702_vm6 = vcmp.gt.f32.partialorder %v615_v15, 0.0  ;;  %v766_v23 = vmul.f32 0.2, %v615_v15 }
 0x103   :  { %1542 = vst [vmem:[%s1953_s2 + $0xd0] sm:$0xff] %v1490_v16   ;;  %vm673_vm4 = vcmp.gt.f32.partialorder %v1616_v19, 0.0  ;;  %v737_v21 = vmul.f32 0.2, %v1616_v19  ;;  %vm705_vm5 = vcmp.gt.f32.partialorder %v1648_v20, 0.0  ;;  %v798_v29 = vsel %vm670_vm3, %v487_v14, %v734_v18 }
 0x104   :  { %v769_v24 = vmul.f32 0.2, %v1648_v20  ;;  %v490_v25 = vpop.f32.mrf.mxu0  ;;  %v618_v26 = vpop.f32.mrf.mxu1  ;;  %v830_v38 = vsel %vm702_vm6, %v615_v15, %v766_v23 }
 0x105   :  { %v801_v27 = vsel %vm673_vm4, %v1616_v19, %v737_v21  ;;  %vm671_vm7 = vcmp.gt.f32.partialorder %v490_v25, 0.0  ;;  %v735_v28 = vmul.f32 0.2, %v490_v25  ;;  %vm703_vm8 = vcmp.gt.f32.partialorder %v618_v26, 0.0 }
 0x106   :  { %v1425_v30 = vpack.c.bf16 %v801_v27, %v800_v17  ;;  %v833_v31 = vsel %vm705_vm5, %v1648_v20, %v769_v24  ;;  %v767_v32 = vmul.f32 0.2, %v618_v26  ;;  %v1619_v33 = vpop.f32.mrf.mxu0  ;;  %v1651_v34 = vpop.f32.mrf.mxu1 }
 0x107   :  { %v1505_v35 = vpack.c.bf16 %v833_v31, %v832_v22  ;;  %v799_v36 = vsel %vm671_vm7, %v490_v25, %v735_v28  ;;  %vm676_vm9 = vcmp.gt.f32.partialorder %v1619_v33, 0.0  ;;  %v740_v37 = vmul.f32 0.2, %v1619_v33 }
 0x108   :  { %1529 = vst [vmem:[%s1953_s2 + $0x68] sm:$0xff] %v1425_v30   ;;  %v1420_v39 = vpack.c.bf16 %v799_v36, %v798_v29  ;;  %v831_v40 = vsel %vm703_vm8, %v618_v26, %v767_v32  ;;  %v503_v41 = vpop.f32.mrf.mxu0  ;;  %v631_v42 = vpop.f32.mrf.mxu1  ;;  %vm708_vm10 = vcmp.gt.f32.partialorder %v1651_v34, 0.0  ;;  %v772_v45 = vmul.f32 0.2, %v1651_v34 }
 0x109   :  { %1545 = vst [vmem:[%s1953_s2 + $0xe8] sm:$0xff] %v1505_v35   ;;  %v1500_v43 = vpack.c.bf16 %v831_v40, %v830_v38  ;;  %v804_v44 = vsel %vm676_vm9, %v1619_v33, %v740_v37  ;;  %v738_v48 = vmul.f32 0.2, %v503_v41  ;;  %vm674_vm13 = vcmp.gt.f32.partialorder %v503_v41, 0.0 }
 0x10a   :  { %1528 = vst [vmem:[%s1953_s2 + $0x60] sm:$0xff] %v1420_v39   ;;  %v1620_v46 = vpop.f32.mrf.mxu0  ;;  %v1652_v47 = vpop.f32.mrf.mxu1  ;;  %vm706_vm14 = vcmp.gt.f32.partialorder %v631_v42, 0.0  ;;  %v770_v50 = vmul.f32 0.2, %v631_v42  ;;  %v836_v56 = vsel %vm708_vm10, %v1651_v34, %v772_v45 }
 0x10b   :  { %1544 = vst [vmem:[%s1953_s2 + $0xe0] sm:$0xff] %v1500_v43   ;;  %vm677_vm11 = vcmp.gt.f32.partialorder %v1620_v46, 0.0  ;;  %v741_v49 = vmul.f32 0.2, %v1620_v46  ;;  %vm709_vm12 = vcmp.gt.f32.partialorder %v1652_v47, 0.0  ;;  %v802_v60 = vsel %vm674_vm13, %v503_v41, %v738_v48 }
 0x10c   :  { %v773_v51 = vmul.f32 0.2, %v1652_v47  ;;  %v506_v52 = vpop.f32.mrf.mxu0  ;;  %v634_v53 = vpop.f32.mrf.mxu1  ;;  %v834_v63 = vsel %vm706_vm14, %v631_v42, %v770_v50 }
 0x10d   :  { %v805_v54 = vsel %vm677_vm11, %v1620_v46, %v741_v49  ;;  %vm675_vm15 = vcmp.gt.f32.partialorder %v506_v52, 0.0  ;;  %v739_v55 = vmul.f32 0.2, %v506_v52  ;;  %vm707_vm0 = vcmp.gt.f32.partialorder %v634_v53, 0.0 }
 0x10e   :  { %v1435_v57 = vpack.c.bf16 %v805_v54, %v804_v44  ;;  %v837_v58 = vsel %vm709_vm12, %v1652_v47, %v773_v51  ;;  %v771_v59 = vmul.f32 0.2, %v634_v53 }
 0x10f   :  { %v1515_v61 = vpack.c.bf16 %v837_v58, %v836_v56  ;;  %v803_v62 = vsel %vm675_vm15, %v506_v52, %v739_v55 }
 0x110   :  { %1531 = vst [vmem:[%s1953_s2 + $0x78] sm:$0xff] %v1435_v57   ;;  %v1430_v0 = vpack.c.bf16 %v803_v62, %v802_v60  ;;  %v835_v1 = vsel %vm707_vm0, %v634_v53, %v771_v59 }
 0x111   :  { %1547 = vst [vmem:[%s1953_s2 + $0xf8] sm:$0xff] %v1515_v61   ;;  %v1510_v2 = vpack.c.bf16 %v835_v1, %v834_v63 }
 0x112   :  { %1530 = vst [vmem:[%s1953_s2 + $0x70] sm:$0xff] %v1430_v0  }
 0x113   :  { %1546 = vst [vmem:[%s1953_s2 + $0xf0] sm:$0xff] %v1510_v2  }

// kernel: _lambda_.5
= control target key start
LH: loop header
LB: loop body
LE: loop exit
PB: predicated region body
PF: predicated region fallthrough
CT: control target
= control target key end

     0   :  { %s686_s1 = inlined_call_operand.vmem [shape: bf16[128,128], index: 1, kind: input, shape index: {}]   ;;  %s687_s0 = inlined_call_operand.vmem [shape: bf16[128,128], index: 0, kind: input, shape index: {}]   ;;  %s688_s2 = inlined_call_operand.vmem [shape: bf16[128,128], index: 2, kind: output, shape index: {0}]   ;;  %s689_s3 = inlined_call_operand.vmem [shape: f32[1,1,128], index: 3, kind: output, shape index: {1}]   ;;  %s690_s4 = inlined_call_operand.vmem [shape: f32[1,1,128], index: 4, kind: output, shape index: {2}]  }
   0x1   :  { %v567_v0 = vld [vmem:[%s686_s1 + $0x38] sm:$0xff]   ;;  %v568_v1 = vld [vmem:[%s686_s1 + $0x30] sm:$0xff]   ;;  %v569_v2 = vld [vmem:[%s686_s1 + $0x28] sm:$0xff]  }
   0x2   :  { %519 = vmatprep.subr.bf16.mxu0 %v567_v0  ;;  %551 = vmatprep.subr.bf16.mxu1 %v567_v0  ;;  %v570_v3 = vld [vmem:[%s686_s1 + $0x20] sm:$0xff]   ;;  %v571_v5 = vld [vmem:[%s686_s1 + $0x18] sm:$0xff]   ;;  %v572_v7 = vld [vmem:[%s686_s1 + $0x10] sm:$0xff]  }
   0x3   :  { %520 = vmatpush3.bf16.msra.mxu0 %v567_v0  ;;  %559 = vmatpush3.bf16.msra.mxu1 %v567_v0  ;;  %v575_v4 = vld [vmem:[%s687_s0] sm:$0xff]   ;;  %v573_v8 = vld [vmem:[%s686_s1 + $0x8] sm:$0xff]   ;;  %v577_v12 = vld [vmem:[%s687_s0 + $0x10] sm:$0xff]  }
   0x4   :  { %521 = vmatprep.subr.bf16.mxu0 %v568_v1  ;;  %552 = vmatprep.subr.bf16.mxu1 %v568_v1  ;;  %v579_v6 = vld [vmem:[%s687_s0 + $0x20] sm:$0xff]   ;;  %v576_v10 = vld [vmem:[%s687_s0 + $0x8] sm:$0xff]   ;;  %v581_v13 = vld [vmem:[%s687_s0 + $0x30] sm:$0xff]  }
   0x5   :  { %535 = vmatprep.mubr.bf16.mxu0 %v575_v4  ;;  %543 = vmatprep.mubr.bf16.mxu1 %v579_v6  ;;  %v574_v9 = vld [vmem:[%s686_s1] sm:$0xff]   ;;  %v580_v11 = vld [vmem:[%s687_s0 + $0x28] sm:$0xff]   ;;  %v578_v14 = vld [vmem:[%s687_s0 + $0x18] sm:$0xff]  }
   0x6   :  { %v582_v15 = vld [vmem:[%s687_s0 + $0x38] sm:$0xff]  }
   0x7   :  { %522 = vmatpush3.bf16.msra.mxu0 %v568_v1  ;;  %560 = vmatpush3.bf16.msra.mxu1 %v568_v1 }
   0x8   :  { %523 = vmatprep.subr.bf16.mxu0 %v569_v2  ;;  %553 = vmatprep.subr.bf16.mxu1 %v569_v2 }
   0xb   :  { %524 = vmatpush3.bf16.msra.mxu0 %v569_v2  ;;  %561 = vmatpush3.bf16.msra.mxu1 %v569_v2 }
   0xc   :  { %525 = vmatprep.subr.bf16.mxu0 %v570_v3  ;;  %554 = vmatprep.subr.bf16.mxu1 %v570_v3 }
   0xf   :  { %526 = vmatpush3.bf16.msra.mxu0 %v570_v3  ;;  %562 = vmatpush3.bf16.msra.mxu1 %v570_v3 }
  0x10   :  { %527 = vmatprep.subr.bf16.mxu0 %v571_v5  ;;  %555 = vmatprep.subr.bf16.mxu1 %v571_v5 }
  0x13   :  { %528 = vmatpush3.bf16.msra.mxu0 %v571_v5  ;;  %563 = vmatpush3.bf16.msra.mxu1 %v571_v5 }
  0x14   :  { %529 = vmatprep.subr.bf16.mxu0 %v572_v7  ;;  %556 = vmatprep.subr.bf16.mxu1 %v572_v7 }
  0x17   :  { %530 = vmatpush3.bf16.msra.mxu0 %v572_v7  ;;  %564 = vmatpush3.bf16.msra.mxu1 %v572_v7 }
  0x18   :  { %531 = vmatprep.subr.bf16.mxu0 %v573_v8  ;;  %557 = vmatprep.subr.bf16.mxu1 %v573_v8 }
  0x1b   :  { %532 = vmatpush3.bf16.msra.mxu0 %v573_v8  ;;  %565 = vmatpush3.bf16.msra.mxu1 %v573_v8 }
  0x1c   :  { %533 = vmatprep.subr.bf16.mxu0 %v574_v9  ;;  %558 = vmatprep.subr.bf16.mxu1 %v574_v9 }
  0x1f   :  { %534 = vmatpush3.bf16.msra.mxu0 %v574_v9  ;;  %566 = vmatpush3.bf16.msra.mxu1 %v574_v9 }
  0x22   :  { %536 = vmatmul.mubr.bf16.vlgmr.msra.gmra.mxu0 %v576_v10  ;;  %544 = vmatmul.mubr.bf16.vlgmr.msra.gmra.mxu1 %v580_v11 }
  0x23   :  { %539 = vmatprep.mubr.bf16.mxu0 %v577_v12  ;;  %547 = vmatprep.mubr.bf16.mxu1 %v581_v13 }
  0x2a   :  { %540 = vmatmul.mubr.bf16.gmra.mxu0 %v578_v14  ;;  %548 = vmatmul.mubr.bf16.gmra.mxu1 %v582_v15 }
  0xe2   :  { %v537_v16 = vpop.f32.mrf.mxu0  ;;  %v545_v17 = vpop.f32.mrf.mxu1 }
  0xe4   :  { %v177_v18 = vpop.f32.mrf.mxu0  ;;  %v209_v19 = vpop.f32.mrf.mxu1 }
  0xe6   :  { %v538_v20 = vpop.f32.mrf.mxu0  ;;  %v546_v21 = vpop.f32.mrf.mxu1 }
  0xe7   :  { %v241_v22 = vpack.c.bf16 %v538_v20, %v537_v16  ;;  %v245_v23 = vpack.c.bf16 %v546_v21, %v545_v17 }
  0xe8   :  { %v180_v24 = vpop.f32.mrf.mxu0  ;;  %v212_v25 = vpop.f32.mrf.mxu1 }
  0xe9   :  { %496 = vst [vmem:[%s688_s2 + $0x8] sm:$0xff] %v241_v22   ;;  %v240_v26 = vpack.c.bf16 %v180_v24, %v177_v18  ;;  %500 = vst [vmem:[%s688_s2 + $0x28] sm:$0xff] %v245_v23   ;;  %v322_v27 = vunpack.c.l.bf16 %v241_v22  ;;  %v244_v29 = vpack.c.bf16 %v212_v25, %v209_v19  ;;  %v323_v38 = vunpack.c.h.bf16 %v241_v22 }
  0xea   :  { %v541_v28 = vpop.f32.mrf.mxu0  ;;  %v549_v30 = vpop.f32.mrf.mxu1  ;;  %v330_v7 = vunpack.c.l.bf16 %v245_v23  ;;  %v331_v11 = vunpack.c.h.bf16 %v245_v23 }
  0xeb   :  { %460 = vst [vmem:[%s688_s2] sm:$0xff] %v240_v26   ;;  %v320_v31 = vunpack.c.l.bf16 %v240_v26  ;;  %v321_v32 = vunpack.c.h.bf16 %v240_v26  ;;  %499 = vst [vmem:[%s688_s2 + $0x20] sm:$0xff] %v244_v29   ;;  %v360_v39 = vmul.f32 %v322_v27, %v322_v27  ;;  %v361_v51 = vmul.f32 %v323_v38, %v323_v38 }
  0xec   :  { %v193_v33 = vpop.f32.mrf.mxu0  ;;  %v225_v34 = vpop.f32.mrf.mxu1  ;;  %v328_v2 = vunpack.c.l.bf16 %v244_v29  ;;  %v329_v5 = vunpack.c.h.bf16 %v244_v29  ;;  %v368_v15 = vmul.f32 %v330_v7, %v330_v7  ;;  %v369_v19 = vmul.f32 %v331_v11, %v331_v11 }
  0xed   :  { %v336_v35 = vadd.f32 %v321_v32, %v320_v31  ;;  %v358_v36 = vmul.f32 %v320_v31, %v320_v31  ;;  %v359_v37 = vmul.f32 %v321_v32, %v321_v32 }
  0xee   :  { %v542_v40 = vpop.f32.mrf.mxu0  ;;  %v550_v41 = vpop.f32.mrf.mxu1  ;;  %v366_v9 = vmul.f32 %v328_v2, %v328_v2  ;;  %v367_v13 = vmul.f32 %v329_v5, %v329_v5 }
  0xef   :  { %v337_v42 = vadd.f32 %v336_v35, %v322_v27  ;;  %v374_v43 = vadd.f32 %v359_v37, %v358_v36  ;;  %v243_v44 = vpack.c.bf16 %v542_v40, %v541_v28  ;;  %v247_v45 = vpack.c.bf16 %v550_v41, %v549_v30 }
  0xf0   :  { %v196_v46 = vpop.f32.mrf.mxu0  ;;  %v228_v47 = vpop.f32.mrf.mxu1 }
  0xf1   :  { %v375_v48 = vadd.f32 %v374_v43, %v360_v39  ;;  %498 = vst [vmem:[%s688_s2 + $0x18] sm:$0xff] %v243_v44   ;;  %v242_v49 = vpack.c.bf16 %v196_v46, %v193_v33  ;;  %502 = vst [vmem:[%s688_s2 + $0x38] sm:$0xff] %v247_v45   ;;  %v246_v50 = vpack.c.bf16 %v228_v47, %v225_v34  ;;  %v326_v55 = vunpack.c.l.bf16 %v243_v44 }
  0xf2   :  { %v338_v54 = vadd.f32 %v337_v42, %v323_v38  ;;  %v327_v59 = vunpack.c.h.bf16 %v243_v44  ;;  %v334_v24 = vunpack.c.l.bf16 %v247_v45  ;;  %v335_v28 = vunpack.c.h.bf16 %v247_v45 }
  0xf3   :  { %497 = vst [vmem:[%s688_s2 + $0x10] sm:$0xff] %v242_v49   ;;  %v324_v52 = vunpack.c.l.bf16 %v242_v49  ;;  %v325_v53 = vunpack.c.h.bf16 %v242_v49  ;;  %501 = vst [vmem:[%s688_s2 + $0x30] sm:$0xff] %v246_v50   ;;  %v376_v58 = vadd.f32 %v375_v48, %v361_v51  ;;  %v364_v63 = vmul.f32 %v326_v55, %v326_v55 }
  0xf4   :  { %v365_v3 = vmul.f32 %v327_v59, %v327_v59  ;;  %v332_v18 = vunpack.c.l.bf16 %v246_v50  ;;  %v333_v21 = vunpack.c.h.bf16 %v246_v50  ;;  %v372_v23 = vmul.f32 %v334_v24, %v334_v24 }
  0xf5   :  { %v339_v56 = vadd.f32 %v338_v54, %v324_v52  ;;  %v362_v57 = vmul.f32 %v324_v52, %v324_v52  ;;  %v363_v61 = vmul.f32 %v325_v53, %v325_v53  ;;  %v373_v34 = vmul.f32 %v335_v28, %v335_v28 }
  0xf6   :  { %v370_v26 = vmul.f32 %v332_v18, %v332_v18  ;;  %v371_v30 = vmul.f32 %v333_v21, %v333_v21 }
  0xf7   :  { %v340_v60 = vadd.f32 %v339_v56, %v325_v53  ;;  %v377_v62 = vadd.f32 %v376_v58, %v362_v57 }
  0xf9   :  { %v341_v0 = vadd.f32 %v340_v60, %v326_v55  ;;  %v378_v1 = vadd.f32 %v377_v62, %v363_v61 }
  0xfb   :  { %v379_v4 = vadd.f32 %v378_v1, %v364_v63  ;;  %v342_v6 = vadd.f32 %v341_v0, %v327_v59 }
  0xfd   :  { %v343_v8 = vadd.f32 %v342_v6, %v328_v2  ;;  %v380_v10 = vadd.f32 %v379_v4, %v365_v3 }
  0xff   :  { %v344_v12 = vadd.f32 %v343_v8, %v329_v5  ;;  %v381_v14 = vadd.f32 %v380_v10, %v366_v9 }
 0x101   :  { %v345_v16 = vadd.f32 %v344_v12, %v330_v7  ;;  %v382_v17 = vadd.f32 %v381_v14, %v367_v13 }
 0x103   :  { %v383_v20 = vadd.f32 %v382_v17, %v368_v15  ;;  %v346_v22 = vadd.f32 %v345_v16, %v331_v11 }
 0x105   :  { %v347_v25 = vadd.f32 %v346_v22, %v332_v18  ;;  %v384_v27 = vadd.f32 %v383_v20, %v369_v19 }
 0x107   :  { %v348_v29 = vadd.f32 %v347_v25, %v333_v21  ;;  %v385_v31 = vadd.f32 %v384_v27, %v370_v26 }
 0x109   :  { %v349_v32 = vadd.f32 %v348_v29, %v334_v24  ;;  %v386_v33 = vadd.f32 %v385_v31, %v371_v30 }
 0x10b   :  { %v350_v35 = vadd.f32 %v349_v32, %v335_v28  ;;  %v387_v36 = vadd.f32 %v386_v33, %v372_v23 }
 0x10d   :  { %v351_v37 = vrot.slane %v350_v35, 4  ;;  %v388_v38 = vadd.f32 %v387_v36, %v373_v34 }
 0x10f   :  { %v352_v39 = vadd.f32 %v351_v37, %v350_v35  ;;  %v389_v40 = vrot.slane %v388_v38, 4 }
 0x111   :  { %v353_v41 = vrot.slane %v352_v39, 2  ;;  %v390_v42 = vadd.f32 %v389_v40, %v388_v38 }
 0x113   :  { %v354_v43 = vadd.f32 %v353_v41, %v352_v39  ;;  %v391_v44 = vrot.slane %v390_v42, 2 }
 0x115   :  { %v355_v46 = vrot.slane %v354_v43, 1  ;;  %v392_v47 = vadd.f32 %v391_v44, %v390_v42 }
 0x117   :  { %v356_v45 = vadd.f32 %v355_v46, %v354_v43  ;;  %v393_v48 = vrot.slane %v392_v47, 1 }
 0x119   :  { %357 = vst [vmem:[%s689_s3] sm:$0x1] %v356_v45  ;;  %v394_v49 = vadd.f32 %v393_v48, %v392_v47 }
 0x11b   :  { %395 = vst [vmem:[%s690_s4] sm:$0x1] %v394_v49 }

// kernel: tile.23
= control target key start
LH: loop header
LB: loop body
LE: loop exit
PB: predicated region body
PF: predicated region fallthrough
CT: control target
= control target key end

     0   :  { %s28_s0 = inlined_call_operand.vmem [shape: f32[16], index: 0, kind: input, shape index: {}]   ;;  %s29_s1 = inlined_call_operand.vmem [shape: f32[16,16], index: 1, kind: output, shape index: {}]  }
   0x1   :  { %v4_v0 = vld [vmem:[%s28_s0] ss:$0 sm:$0xff] }
   0x2   :  { %5 = vst [vmem:[%s29_s1] sm:$0xff] %v4_v0  ;;  %8 = vst [vmem:[%s29_s1 + $0x8] sm:$0xff] %v4_v0 }

// kernel: tile.24
= control target key start
LH: loop header
LB: loop body
LE: loop exit
PB: predicated region body
PF: predicated region fallthrough
CT: control target
= control target key end

     0   :  { %s7_s6 = smov 3  ;;  %s21_s9 = smov 3  ;;  %vm4_vm0 = vcmask 130048   ;;  %vm11_vm1 = vcmask 1048448   ;;  %vm18_vm2 = vcmask 917248   ;;  %vm25_vm3 = vcmask 786048   ;;  %s131_s0 = inlined_call_operand.vmem [shape: f32[16,16], index: 0, kind: input, shape index: {}]   ;;  %s132_s1 = inlined_call_operand.vmem [shape: f32[1,256], index: 1, kind: output, shape index: {}]  }
   0x1   :  { %v69_v0 = vld [vmem:[%s131_s0 + $0x7] ss:$8 sm:%s7_s6]   ;;  %s84_s10 = smov 112   ;;  %v71_v1 = vld [vmem:[%s131_s0 + $0x5] ss:$8 sm:%s21_s9]   ;;  %s14_s13 = smov 3 }
   0x2   :  { %9 = vrot.lane.b32.xlu0 %v69_v0, %s84_s10  ;;  %s85_s14 = smov 80   ;;  %v70_v2 = vld [vmem:[%s131_s0 + $0x6] ss:$8 sm:%s14_s13]   ;;  %s28_s17 = smov 3  ;;  %vm32_vm4 = vcmask 654848   ;;  %vm39_vm5 = vcmask 523648  }
   0x3   :  { %23 = vrot.lane.b32.xlu1 %v71_v1, %s85_s14  ;;  %v72_v3 = vld [vmem:[%s131_s0 + $0x4] ss:$8 sm:%s28_s17]   ;;  %s35_s20 = smov 3  ;;  %s42_s21 = smov 3  ;;  %vm46_vm6 = vcmask 392448   ;;  %vm53_vm7 = vcmask 261248  }
   0x4   :  { %s86_s22 = smov 96   ;;  %s87_s23 = smov 64   ;;  %v73_v4 = vld [vmem:[%s131_s0 + $0x3] ss:$8 sm:%s35_s20]   ;;  %v74_v5 = vld [vmem:[%s131_s0 + $0x2] ss:$8 sm:%s42_s21]  }
   0x5   :  { %s2_s26 = smov 3  ;;  %s49_s29 = smov 3 }
   0x6   :  { %16 = vrot.lane.b32.xlu0 %v70_v2, %s86_s22  ;;  %v3_v6 = vld [vmem:[%s131_s0] ss:$8 sm:%s2_s26]   ;;  %s88_s3 = smov 48   ;;  %s89_s4 = smov 32  }
   0x7   :  { %30 = vrot.lane.b32.xlu1 %v72_v3, %s87_s23  ;;  %5 = vst.msk [vmem:[#allocation0] ss:$8 sm:$0x3] %vm4_vm0, %v3_v6   ;;  %v75_v7 = vld [vmem:[%s131_s0 + $0x1] ss:$8 sm:%s49_s29]   ;;  %s90_s0 = smov 16  }
   0xa   :  { %37 = vrot.lane.b32.xlu0 %v73_v4, %s88_s3 }
   0xb   :  { %44 = vrot.lane.b32.xlu1 %v74_v5, %s89_s4 }
   0xe   :  { %51 = vrot.lane.b32.xlu0 %v75_v7, %s90_s0 }
  0x74   :  { %v10_v8 = vpop.permute.xlu0 %9  }
  0x75   :  { %12 = vst.msk [vmem:[#allocation0] ss:$8 sm:$0x3] %vm11_vm1, %v10_v8   ;;  %v24_v9 = vpop.permute.xlu1 %23  }
  0x78   :  { %v17_v10 = vpop.permute.xlu0 %16  }
  0x79   :  { %19 = vst.msk [vmem:[#allocation0] ss:$8 sm:$0x3] %vm18_vm2, %v17_v10   ;;  %v31_v11 = vpop.permute.xlu1 %30  }
  0x7a   :  { %26 = vst.msk [vmem:[#allocation0] ss:$8 sm:$0x3] %vm25_vm3, %v24_v9  }
  0x7b   :  { %33 = vst.msk [vmem:[#allocation0] ss:$8 sm:$0x3] %vm32_vm4, %v31_v11  }
  0x7c   :  { %v38_v12 = vpop.permute.xlu0 %37  }
  0x7d   :  { %40 = vst.msk [vmem:[#allocation0] ss:$8 sm:$0x3] %vm39_vm5, %v38_v12   ;;  %v45_v13 = vpop.permute.xlu1 %44  }
  0x7e   :  { %47 = vst.msk [vmem:[#allocation0] ss:$8 sm:$0x3] %vm46_vm6, %v45_v13  }
  0x80   :  { %v52_v14 = vpop.permute.xlu0 %51  }
  0x81   :  { %54 = vst.msk [vmem:[#allocation0] ss:$8 sm:$0x3] %vm53_vm7, %v52_v14  }
  0x88   :  { %v59_v15 = vld [vmem:[#allocation0] sm:$0x1]  ;;  %v64_v16 = vld [vmem:[#allocation0 + $0x8] sm:$0x1] }
  0x89   :  { %62 = vst [vmem:[%s132_s1] sm:$0x1] %v59_v15  ;;  %76 = vst [vmem:[%s132_s1 + $0x1] sm:$0x1] %v64_v16 }

// kernel: tile.33
= control target key start
LH: loop header
LB: loop body
LE: loop exit
PB: predicated region body
PF: predicated region fallthrough
CT: control target
= control target key end

     0   :  { %s28_s0 = inlined_call_operand.vmem [shape: f32[32], index: 0, kind: input, shape index: {}]   ;;  %s29_s1 = inlined_call_operand.vmem [shape: f32[16,32], index: 1, kind: output, shape index: {}]  }
   0x1   :  { %v4_v0 = vld [vmem:[%s28_s0] ss:$0 sm:$0xff] }
   0x2   :  { %5 = vst [vmem:[%s29_s1] sm:$0xff] %v4_v0  ;;  %8 = vst [vmem:[%s29_s1 + $0x8] sm:$0xff] %v4_v0 }

// kernel: tile.34
= control target key start
LH: loop header
LB: loop body
LE: loop exit
PB: predicated region body
PF: predicated region fallthrough
CT: control target
= control target key end

     0   :  { %s62_s8 = smov 96   ;;  %vm3_vm0 = vcmask 261120   ;;  %s64_s15 = smov 64   ;;  %vm9_vm1 = vcmask 1048320   ;;  %vm15_vm2 = vcmask 785920   ;;  %vm21_vm3 = vcmask 523520   ;;  %s99_s0 = inlined_call_operand.vmem [shape: f32[16,32], index: 0, kind: input, shape index: {}]   ;;  %s100_s1 = inlined_call_operand.vmem [shape: f32[1,512], index: 1, kind: output, shape index: {}]  }
   0x1   :  { %v53_v0 = vld [vmem:[%s99_s0 + $0x3] ss:$4 sm:$0xf]   ;;  %v54_v1 = vld [vmem:[%s99_s0 + $0x2] ss:$4 sm:$0xf]  }
   0x2   :  { %7 = vrot.lane.b32.xlu0 %v53_v0, %s62_s8  ;;  %v55_v2 = vld [vmem:[%s99_s0 + $0x1] ss:$4 sm:$0xf]   ;;  %v2_v3 = vld [vmem:[%s99_s0] ss:$4 sm:$0xf]  }
   0x3   :  { %s63_s0 = smov 32   ;;  %4 = vst.msk [vmem:[#allocation0] ss:$8 sm:$0xf] %vm3_vm0, %v2_v3  }
   0x4   :  { %19 = vrot.lane.b32.xlu1 %v55_v2, %s63_s0 }
   0x6   :  { %13 = vrot.lane.b32.xlu0 %v54_v1, %s64_s15 }
  0x74   :  { %v8_v4 = vpop.permute.xlu0 %7  }
  0x75   :  { %10 = vst.msk [vmem:[#allocation0] ss:$8 sm:$0xf] %vm9_vm1, %v8_v4  }
  0x76   :  { %v20_v5 = vpop.permute.xlu1 %19  }
  0x78   :  { %v14_v6 = vpop.permute.xlu0 %13  }
  0x79   :  { %16 = vst.msk [vmem:[#allocation0] ss:$8 sm:$0xf] %vm15_vm2, %v14_v6  }
  0x7a   :  { %22 = vst.msk [vmem:[#allocation0] ss:$8 sm:$0xf] %vm21_vm3, %v20_v5  }
  0x81   :  { %v27_v7 = vld [vmem:[#allocation0] sm:$0x1]  ;;  %v32_v8 = vld [vmem:[#allocation0 + $0x8] sm:$0x1]  ;;  %v38_v9 = vld [vmem:[#allocation0 + $0x10] sm:$0x1] }
  0x82   :  { %30 = vst [vmem:[%s100_s1] sm:$0x1] %v27_v7  ;;  %56 = vst [vmem:[%s100_s1 + $0x1] sm:$0x1] %v32_v8  ;;  %v45_v10 = vld [vmem:[#allocation0 + $0x18] sm:$0x1] }
  0x83   :  { %57 = vst [vmem:[%s100_s1 + $0x2] sm:$0x1] %v38_v9  ;;  %58 = vst [vmem:[%s100_s1 + $0x3] sm:$0x1] %v45_v10 }

// kernel: _lambda_.6
= control target key start
LH: loop header
LB: loop body
LE: loop exit
PB: predicated region body
PF: predicated region fallthrough
CT: control target
= control target key end

     0   :  { %v35_v5 = vlaneseq  ;;  %s548_s3 = inlined_call_operand.vmem [shape: bf16[256,128], index: 3, kind: input, shape index: {}]   ;;  %s549_s0 = inlined_call_operand.vmem [shape: bf16[32,256], index: 0, kind: input, shape index: {}]   ;;  %s550_s1 = inlined_call_operand.vmem [shape: f32[1,256], index: 1, kind: input, shape index: {}]   ;;  %s551_s2 = inlined_call_operand.vmem [shape: f32[1,256], index: 2, kind: input, shape index: {}]   ;;  %s552_s4 = inlined_call_operand.vmem [shape: bf16[32,128], index: 4, kind: output, shape index: {0}]   ;;  %s553_s5 = inlined_call_operand.vmem [shape: f32[1,1,128], index: 5, kind: output, shape index: {1}]   ;;  %s554_s6 = inlined_call_operand.vmem [shape: f32[1,1,128], index: 6, kind: output, shape index: {2}]  }
   0x1   :  { %v417_v0 = vld [vmem:[%s548_s3 + $0x78] sm:$0xff]   ;;  %v419_v2 = vld [vmem:[%s548_s3 + $0x70] sm:$0xff]   ;;  %v421_v4 = vld [vmem:[%s548_s3 + $0x68] sm:$0xff]  }
   0x2   :  { %v418_v1 = vld [vmem:[%s548_s3 + $0x38] sm:$0xff]   ;;  %373 = vmatprep.subr.bf16.mxu0 %v417_v0  ;;  %401 = vmatprep.subr.bf16.mxu1 %v417_v0  ;;  %v420_v3 = vld [vmem:[%s548_s3 + $0x30] sm:$0xff]   ;;  %v422_v6 = vld [vmem:[%s548_s3 + $0x28] sm:$0xff]   ;;  %v36_v8 = vshrl.u32 %v35_v5, 7 }
   0x3   :  { %374 = vmatpush3.bf16.msra.mxu0 %v418_v1  ;;  %409 = vmatpush3.bf16.msra.mxu1 %v418_v1  ;;  %v423_v7 = vld [vmem:[%s548_s3 + $0x60] sm:$0xff]   ;;  %v425_v10 = vld [vmem:[%s548_s3 + $0x58] sm:$0xff]   ;;  %v427_v14 = vld [vmem:[%s548_s3 + $0x50] sm:$0xff]  }
   0x4   :  { %375 = vmatprep.subr.bf16.mxu0 %v419_v2  ;;  %402 = vmatprep.subr.bf16.mxu1 %v419_v2  ;;  %v424_v9 = vld [vmem:[%s548_s3 + $0x20] sm:$0xff]   ;;  %v37_v11 = vsub.s32 0, %v36_v8  ;;  %v426_v12 = vld [vmem:[%s548_s3 + $0x18] sm:$0xff]   ;;  %v41_v13 = vsub.s32 1, %v36_v8  ;;  %v22_v16 = vld [vmem:[%s549_s0 + $0x8] sm:$0xff] }
   0x5   :  { %v21_v15 = vld [vmem:[%s549_s0] sm:$0xff]  ;;  %v27_v20 = vunpack.c.l.bf16 %v22_v16  ;;  %v28_v21 = vunpack.c.h.bf16 %v22_v16  ;;  %v23_v23 = vld [vmem:[%s549_s0 + $0x10] sm:$0xff]  ;;  %v24_v24 = vld [vmem:[%s549_s0 + $0x18] sm:$0xff] }
   0x6   :  { %v33_v17 = vld [vmem:[%s550_s1] sm:$0x3]  ;;  %v25_v18 = vunpack.c.l.bf16 %v21_v15  ;;  %v26_v19 = vunpack.c.h.bf16 %v21_v15  ;;  %v428_v29 = vld [vmem:[%s548_s3 + $0x10] sm:$0xff]   ;;  %v29_v30 = vunpack.c.l.bf16 %v23_v23  ;;  %v30_v31 = vunpack.c.h.bf16 %v23_v23  ;;  %v429_v34 = vld [vmem:[%s548_s3 + $0x48] sm:$0xff]  }
   0x7   :  { %376 = vmatpush3.bf16.msra.mxu0 %v420_v3  ;;  %410 = vmatpush3.bf16.msra.mxu1 %v420_v3  ;;  %v53_v22 = vld [vmem:[%s551_s2] sm:$0x3]  ;;  %v38_v25 = vrot.slane %v33_v17, %v37_v11  ;;  %v42_v26 = vrot.slane %v33_v17, %v41_v13  ;;  %v31_v32 = vunpack.c.l.bf16 %v24_v24  ;;  %v32_v33 = vunpack.c.h.bf16 %v24_v24  ;;  %v430_v46 = vld [vmem:[%s548_s3 + $0x8] sm:$0xff]  }
   0x8   :  { %377 = vmatprep.subr.bf16.mxu0 %v421_v4  ;;  %403 = vmatprep.subr.bf16.mxu1 %v421_v4  ;;  %v58_v27 = vrot.slane %v53_v22, %v37_v11  ;;  %v62_v28 = vrot.slane %v53_v22, %v41_v13  ;;  %v431_v47 = vld [vmem:[%s548_s3 + $0x40] sm:$0xff]  }
   0x9   :  { %v46_v35 = vmul.f32 %v42_v26, %v26_v19  ;;  %v48_v36 = vmul.f32 %v42_v26, %v28_v21  ;;  %v45_v37 = vmul.f32 %v38_v25, %v25_v18  ;;  %v50_v38 = vmul.f32 %v42_v26, %v30_v31  ;;  %v432_v57 = vld [vmem:[%s548_s3] sm:$0xff]  }
   0xa   :  { %v52_v39 = vmul.f32 %v42_v26, %v32_v33  ;;  %v47_v40 = vmul.f32 %v38_v25, %v27_v20  ;;  %v49_v41 = vmul.f32 %v38_v25, %v29_v30  ;;  %v51_v45 = vmul.f32 %v38_v25, %v31_v32 }
   0xb   :  { %378 = vmatpush3.bf16.msra.mxu0 %v422_v6  ;;  %411 = vmatpush3.bf16.msra.mxu1 %v422_v6  ;;  %v66_v42 = vadd.f32 %v62_v28, %v46_v35  ;;  %v68_v43 = vadd.f32 %v62_v28, %v48_v36  ;;  %v65_v44 = vadd.f32 %v58_v27, %v45_v37 }
   0xc   :  { %379 = vmatprep.subr.bf16.mxu0 %v423_v7  ;;  %404 = vmatprep.subr.bf16.mxu1 %v423_v7  ;;  %v70_v48 = vadd.f32 %v62_v28, %v50_v38  ;;  %v72_v49 = vadd.f32 %v62_v28, %v52_v39  ;;  %v67_v50 = vadd.f32 %v58_v27, %v47_v40 }
   0xd   :  { %vm74_vm0 = vcmp.gt.f32.partialorder %v66_v42, 0.0  ;;  %vm76_vm1 = vcmp.gt.f32.partialorder %v68_v43, 0.0  ;;  %v82_v51 = vmul.f32 0.2, %v66_v42  ;;  %v84_v52 = vmul.f32 0.2, %v68_v43 }
   0xe   :  { %vm78_vm2 = vcmp.gt.f32.partialorder %v70_v48, 0.0  ;;  %vm80_vm3 = vcmp.gt.f32.partialorder %v72_v49, 0.0  ;;  %v86_v53 = vmul.f32 0.2, %v70_v48  ;;  %v88_v54 = vmul.f32 0.2, %v72_v49 }
   0xf   :  { %380 = vmatpush3.bf16.msra.mxu0 %v424_v9  ;;  %412 = vmatpush3.bf16.msra.mxu1 %v424_v9  ;;  %v90_v55 = vsel %vm74_vm0, %v66_v42, %v82_v51  ;;  %v92_v56 = vsel %vm76_vm1, %v68_v43, %v84_v52  ;;  %vm73_vm4 = vcmp.gt.f32.partialorder %v65_v44, 0.0  ;;  %vm75_vm5 = vcmp.gt.f32.partialorder %v67_v50, 0.0 }
  0x10   :  { %381 = vmatprep.subr.bf16.mxu0 %v425_v10  ;;  %405 = vmatprep.subr.bf16.mxu1 %v425_v10  ;;  %v98_v58 = vpack.c.bf16 %v92_v56, %v90_v55  ;;  %v94_v59 = vsel %vm78_vm2, %v70_v48, %v86_v53  ;;  %v96_v60 = vsel %vm80_vm3, %v72_v49, %v88_v54  ;;  %v81_v61 = vmul.f32 0.2, %v65_v44 }
  0x11   :  { %v100_v62 = vpack.c.bf16 %v96_v60, %v94_v59  ;;  %v83_v63 = vmul.f32 0.2, %v67_v50  ;;  %v69_v0 = vadd.f32 %v58_v27, %v49_v41  ;;  %v71_v1 = vadd.f32 %v58_v27, %v51_v45 }
  0x12   :  { %261 = vmatprep.mubr.bf16.mxu0 %v98_v58  ;;  %v89_v2 = vsel %vm73_vm4, %v65_v44, %v81_v61 }
  0x13   :  { %382 = vmatpush3.bf16.msra.mxu0 %v426_v12  ;;  %413 = vmatpush3.bf16.msra.mxu1 %v426_v12  ;;  %v91_v3 = vsel %vm75_vm5, %v67_v50, %v83_v63  ;;  %vm77_vm6 = vcmp.gt.f32.partialorder %v69_v0, 0.0  ;;  %vm79_vm7 = vcmp.gt.f32.partialorder %v71_v1, 0.0  ;;  %v85_v4 = vmul.f32 0.2, %v69_v0 }
  0x14   :  { %383 = vmatprep.subr.bf16.mxu0 %v427_v14  ;;  %406 = vmatprep.subr.bf16.mxu1 %v427_v14  ;;  %v97_v5 = vpack.c.bf16 %v91_v3, %v89_v2  ;;  %v87_v6 = vmul.f32 0.2, %v71_v1 }
  0x15   :  { %269 = vmatprep.mubr.bf16.mxu1 %v100_v62  ;;  %v93_v7 = vsel %vm77_vm6, %v69_v0, %v85_v4 }
  0x16   :  { %v95_v8 = vsel %vm79_vm7, %v71_v1, %v87_v6 }
  0x17   :  { %384 = vmatpush3.bf16.msra.mxu0 %v428_v29  ;;  %414 = vmatpush3.bf16.msra.mxu1 %v428_v29  ;;  %v99_v9 = vpack.c.bf16 %v95_v8, %v93_v7 }
  0x18   :  { %385 = vmatprep.subr.bf16.mxu0 %v429_v34  ;;  %407 = vmatprep.subr.bf16.mxu1 %v429_v34 }
  0x1b   :  { %386 = vmatpush3.bf16.msra.mxu0 %v430_v46  ;;  %415 = vmatpush3.bf16.msra.mxu1 %v430_v46 }
  0x1c   :  { %387 = vmatprep.subr.bf16.mxu0 %v431_v47  ;;  %408 = vmatprep.subr.bf16.mxu1 %v431_v47 }
  0x1f   :  { %388 = vmatpush3.bf16.msra.mxu0 %v432_v57  ;;  %416 = vmatpush3.bf16.msra.mxu1 %v432_v57 }
  0x22   :  { %262 = vmatmul.mubr.bf16.vlgmr.msra.gmra.mxu0 %v97_v5  ;;  %270 = vmatmul.mubr.bf16.vlgmr.msra.gmra.mxu1 %v99_v9 }
  0xe2   :  { %v389_v10 = vpop.f32.mrf.mxu0  ;;  %v395_v11 = vpop.f32.mrf.mxu1 }
  0xe4   :  { %v390_v12 = vpop.f32.mrf.mxu0  ;;  %v396_v13 = vpop.f32.mrf.mxu1 }
  0xe5   :  { %v391_v17 = vadd.f32 %v390_v12, %v389_v10  ;;  %v397_v20 = vadd.f32 %v396_v13, %v395_v11 }
  0xe6   :  { %v392_v14 = vpop.f32.mrf.mxu0  ;;  %v398_v15 = vpop.f32.mrf.mxu1 }
  0xe8   :  { %v393_v16 = vpop.f32.mrf.mxu0  ;;  %v399_v19 = vpop.f32.mrf.mxu1 }
  0xe9   :  { %v394_v18 = vadd.f32 %v393_v16, %v392_v14  ;;  %v400_v22 = vadd.f32 %v399_v19, %v398_v15 }
  0xeb   :  { %v278_v21 = vpack.c.bf16 %v394_v18, %v391_v17  ;;  %v279_v25 = vpack.c.bf16 %v400_v22, %v397_v20 }
  0xed   :  { %366 = vst [vmem:[%s552_s4] sm:$0xff] %v278_v21   ;;  %v298_v23 = vunpack.c.l.bf16 %v278_v21  ;;  %v299_v24 = vunpack.c.h.bf16 %v278_v21  ;;  %372 = vst [vmem:[%s552_s4 + $0x8] sm:$0xff] %v279_v25   ;;  %v300_v29 = vunpack.c.l.bf16 %v279_v25  ;;  %v301_v30 = vunpack.c.h.bf16 %v279_v25 }
  0xef   :  { %v302_v26 = vadd.f32 %v299_v24, %v298_v23  ;;  %v312_v27 = vmul.f32 %v298_v23, %v298_v23  ;;  %v313_v28 = vmul.f32 %v299_v24, %v299_v24  ;;  %v314_v33 = vmul.f32 %v300_v29, %v300_v29 }
  0xf0   :  { %v315_v35 = vmul.f32 %v301_v30, %v301_v30 }
  0xf1   :  { %v316_v31 = vadd.f32 %v313_v28, %v312_v27  ;;  %v303_v32 = vadd.f32 %v302_v26, %v300_v29 }
  0xf3   :  { %v304_v34 = vadd.f32 %v303_v32, %v301_v30  ;;  %v317_v36 = vadd.f32 %v316_v31, %v314_v33 }
  0xf5   :  { %v305_v37 = vrot.slane %v304_v34, 4  ;;  %v318_v38 = vadd.f32 %v317_v36, %v315_v35 }
  0xf7   :  { %v306_v39 = vadd.f32 %v305_v37, %v304_v34  ;;  %v319_v40 = vrot.slane %v318_v38, 4 }
  0xf9   :  { %v307_v41 = vrot.slane %v306_v39, 2  ;;  %v320_v42 = vadd.f32 %v319_v40, %v318_v38 }
  0xfb   :  { %v308_v43 = vadd.f32 %v307_v41, %v306_v39  ;;  %v321_v44 = vrot.slane %v320_v42, 2 }
  0xfd   :  { %v309_v45 = vrot.slane %v308_v43, 1  ;;  %v322_v46 = vadd.f32 %v321_v44, %v320_v42 }
  0xff   :  { %v310_v47 = vadd.f32 %v309_v45, %v308_v43  ;;  %v323_v48 = vrot.slane %v322_v46, 1 }
 0x101   :  { %311 = vst [vmem:[%s553_s5] sm:$0x1] %v310_v47  ;;  %v324_v49 = vadd.f32 %v323_v48, %v322_v46 }
 0x103   :  { %325 = vst [vmem:[%s554_s6] sm:$0x1] %v324_v49 }

// kernel: _lambda_.7
= control target key start
LH: loop header
LB: loop body
LE: loop exit
PB: predicated region body
PF: predicated region fallthrough
CT: control target
= control target key end

     0   :  { %v31_v21 = vlaneseq  ;;  %v714_v46 = vmov 0.0   ;;  %vm715_vm4 = vmmov 0   ;;  %s889_s3 = inlined_call_operand.vmem [shape: bf16[512,128], index: 3, kind: input, shape index: {}]   ;;  %s890_s0 = inlined_call_operand.vmem [shape: bf16[8,512], index: 0, kind: input, shape index: {}]   ;;  %s891_s1 = inlined_call_operand.vmem [shape: f32[1,512], index: 1, kind: input, shape index: {}]   ;;  %s892_s2 = inlined_call_operand.vmem [shape: f32[1,512], index: 2, kind: input, shape index: {}]   ;;  %s893_s4 = inlined_call_operand.vmem [shape: bf16[128,128], index: 4, kind: input, shape index: {}]   ;;  %s894_s5 = inlined_call_operand.vmem [shape: f32[8,128], index: 5, kind: output, shape index: {0}]   ;;  %s895_s6 = inlined_call_operand.vmem [shape: f32[8,128], index: 6, kind: output, shape index: {1}]  }
   0x1   :  { %v670_v0 = vld [vmem:[%s889_s3 + $0x78] sm:$0xff]   ;;  %v674_v4 = vld [vmem:[%s889_s3 + $0x70] sm:$0xff]   ;;  %v678_v8 = vld [vmem:[%s889_s3 + $0x68] sm:$0xff]  }
   0x2   :  { %v671_v1 = vld [vmem:[%s889_s3 + $0xf8] sm:$0xff]   ;;  %595 = vmatprep.subr.bf16.mxu0 %v670_v0  ;;  %v675_v5 = vld [vmem:[%s889_s3 + $0xf0] sm:$0xff]   ;;  %v679_v9 = vld [vmem:[%s889_s3 + $0xe8] sm:$0xff]   ;;  %v32_v26 = vshrl.u32 %v31_v21, 7 }
   0x3   :  { %v672_v2 = vld [vmem:[%s889_s3 + $0x38] sm:$0xff]   ;;  %617 = vmatprep.subr.bf16.mxu1 %v671_v1  ;;  %v676_v6 = vld [vmem:[%s889_s3 + $0x30] sm:$0xff]   ;;  %v680_v10 = vld [vmem:[%s889_s3 + $0x28] sm:$0xff]  }
   0x4   :  { %v673_v3 = vld [vmem:[%s889_s3 + $0xb8] sm:$0xff]   ;;  %596 = vmatpush3.bf16.msra.mxu0 %v672_v2  ;;  %v677_v7 = vld [vmem:[%s889_s3 + $0xb0] sm:$0xff]   ;;  %v681_v11 = vld [vmem:[%s889_s3 + $0xa8] sm:$0xff]   ;;  %v37_v31 = vsub.s32 1, %v32_v26  ;;  %v45_v33 = vsub.s32 3, %v32_v26  ;;  %v33_v35 = vsub.s32 0, %v32_v26 }
   0x5   :  { %618 = vmatpush3.bf16.msra.mxu1 %v673_v3  ;;  %597 = vmatprep.subr.bf16.mxu0 %v674_v4  ;;  %v682_v12 = vld [vmem:[%s889_s3 + $0x60] sm:$0xff]   ;;  %v686_v16 = vld [vmem:[%s889_s3 + $0x58] sm:$0xff]   ;;  %v690_v20 = vld [vmem:[%s889_s3 + $0x50] sm:$0xff]   ;;  %v41_v37 = vsub.s32 2, %v32_v26 }
   0x6   :  { %619 = vmatprep.subr.bf16.mxu1 %v675_v5  ;;  %v683_v13 = vld [vmem:[%s889_s3 + $0xe0] sm:$0xff]   ;;  %v687_v17 = vld [vmem:[%s889_s3 + $0xd8] sm:$0xff]   ;;  %v691_v22 = vld [vmem:[%s889_s3 + $0xd0] sm:$0xff]  }
   0x7   :  { %v684_v14 = vld [vmem:[%s889_s3 + $0x20] sm:$0xff]   ;;  %v688_v18 = vld [vmem:[%s889_s3 + $0x18] sm:$0xff]   ;;  %v692_v23 = vld [vmem:[%s889_s3 + $0x10] sm:$0xff]  }
   0x8   :  { %598 = vmatpush3.bf16.msra.mxu0 %v676_v6  ;;  %v685_v15 = vld [vmem:[%s889_s3 + $0xa0] sm:$0xff]   ;;  %v689_v19 = vld [vmem:[%s889_s3 + $0x98] sm:$0xff]   ;;  %v693_v24 = vld [vmem:[%s889_s3 + $0x90] sm:$0xff]  }
   0x9   :  { %620 = vmatpush3.bf16.msra.mxu1 %v677_v7  ;;  %599 = vmatprep.subr.bf16.mxu0 %v678_v8  ;;  %v694_v25 = vld [vmem:[%s889_s3 + $0x48] sm:$0xff]   ;;  %v698_v30 = vld [vmem:[%s889_s3 + $0x40] sm:$0xff]   ;;  %v702_v8 = vld [vmem:[%s893_s4 + $0x38] sm:$0xff]  }
   0xa   :  { %621 = vmatprep.subr.bf16.mxu1 %v679_v9  ;;  %v695_v27 = vld [vmem:[%s889_s3 + $0xc8] sm:$0xff]   ;;  %v699_v32 = vld [vmem:[%s889_s3 + $0xc0] sm:$0xff]  }
   0xb   :  { %v696_v28 = vld [vmem:[%s889_s3 + $0x8] sm:$0xff]   ;;  %v700_v34 = vld [vmem:[%s889_s3] sm:$0xff]  }
   0xc   :  { %600 = vmatpush3.bf16.msra.mxu0 %v680_v10  ;;  %v697_v29 = vld [vmem:[%s889_s3 + $0x88] sm:$0xff]   ;;  %v701_v36 = vld [vmem:[%s889_s3 + $0x80] sm:$0xff]  }
   0xd   :  { %622 = vmatpush3.bf16.msra.mxu1 %v681_v11  ;;  %601 = vmatprep.subr.bf16.mxu0 %v682_v12  ;;  %v23_v38 = vld [vmem:[%s890_s0] sm:$0xff]  ;;  %v24_v45 = vld [vmem:[%s890_s0 + $0x8] sm:$0xff]  ;;  %v703_v12 = vld [vmem:[%s893_s4 + $0x30] sm:$0xff]  }
   0xe   :  { %623 = vmatprep.subr.bf16.mxu1 %v683_v13  ;;  %v29_v39 = vld [vmem:[%s891_s1] sm:$0xf]  ;;  %v25_v41 = vunpack.c.l.bf16 %v23_v38  ;;  %v26_v42 = vunpack.c.h.bf16 %v23_v38  ;;  %v27_v47 = vunpack.c.l.bf16 %v24_v45  ;;  %v28_v48 = vunpack.c.h.bf16 %v24_v45  ;;  %v704_v13 = vld [vmem:[%s893_s4 + $0x28] sm:$0xff]  }
   0xf   :  { %v55_v40 = vld [vmem:[%s892_s2] sm:$0xf]  ;;  %v38_v43 = vrot.slane %v29_v39, %v37_v31  ;;  %v46_v49 = vrot.slane %v29_v39, %v45_v33  ;;  %v34_v52 = vrot.slane %v29_v39, %v33_v35  ;;  %v42_v54 = vrot.slane %v29_v39, %v41_v37 }
  0x10   :  { %602 = vmatpush3.bf16.msra.mxu0 %v684_v14  ;;  %v64_v44 = vrot.slane %v55_v40, %v37_v31  ;;  %v72_v50 = vrot.slane %v55_v40, %v45_v33  ;;  %v60_v53 = vrot.slane %v55_v40, %v33_v35  ;;  %v68_v56 = vrot.slane %v55_v40, %v41_v37  ;;  %v705_v14 = vld [vmem:[%s893_s4 + $0x20] sm:$0xff]  }
  0x11   :  { %624 = vmatpush3.bf16.msra.mxu1 %v685_v15  ;;  %603 = vmatprep.subr.bf16.mxu0 %v686_v16  ;;  %v52_v51 = vmul.f32 %v38_v43, %v26_v42  ;;  %v54_v55 = vmul.f32 %v46_v49, %v28_v48  ;;  %v51_v58 = vmul.f32 %v34_v52, %v25_v41  ;;  %v706_v15 = vld [vmem:[%s893_s4 + $0x18] sm:$0xff]   ;;  %v707_v16 = vld [vmem:[%s893_s4 + $0x10] sm:$0xff]  }
  0x12   :  { %625 = vmatprep.subr.bf16.mxu1 %v687_v17  ;;  %v53_v59 = vmul.f32 %v42_v54, %v27_v47  ;;  %v708_v17 = vld [vmem:[%s893_s4 + $0x8] sm:$0xff]  }
  0x13   :  { %v78_v57 = vadd.f32 %v64_v44, %v52_v51  ;;  %v80_v60 = vadd.f32 %v72_v50, %v54_v55  ;;  %v77_v62 = vadd.f32 %v60_v53, %v51_v58 }
  0x14   :  { %604 = vmatpush3.bf16.msra.mxu0 %v688_v18  ;;  %v79_v63 = vadd.f32 %v68_v56, %v53_v59  ;;  %v709_v18 = vld [vmem:[%s893_s4] sm:$0xff]  }
  0x15   :  { %626 = vmatpush3.bf16.msra.mxu1 %v689_v19  ;;  %605 = vmatprep.subr.bf16.mxu0 %v690_v20  ;;  %vm82_vm0 = vcmp.gt.f32.partialorder %v78_v57, 0.0  ;;  %v86_v61 = vmul.f32 0.2, %v78_v57  ;;  %vm84_vm1 = vcmp.gt.f32.partialorder %v80_v60, 0.0  ;;  %v88_v0 = vmul.f32 0.2, %v80_v60 }
  0x16   :  { %627 = vmatprep.subr.bf16.mxu1 %v691_v22  ;;  %vm81_vm2 = vcmp.gt.f32.partialorder %v77_v62, 0.0  ;;  %v85_v2 = vmul.f32 0.2, %v77_v62  ;;  %vm83_vm3 = vcmp.gt.f32.partialorder %v79_v63, 0.0  ;;  %v87_v5 = vmul.f32 0.2, %v79_v63 }
  0x17   :  { %v90_v1 = vsel %vm82_vm0, %v78_v57, %v86_v61  ;;  %v92_v4 = vsel %vm84_vm1, %v80_v60, %v88_v0 }
  0x18   :  { %606 = vmatpush3.bf16.msra.mxu0 %v692_v23  ;;  %v94_v3 = vpack.c.bf16 %v90_v1, %v90_v1  ;;  %v96_v6 = vpack.c.bf16 %v92_v4, %v92_v4  ;;  %v89_v7 = vsel %vm81_vm2, %v77_v62, %v85_v2  ;;  %v91_v10 = vsel %vm83_vm3, %v79_v63, %v87_v5 }
  0x19   :  { %628 = vmatpush3.bf16.msra.mxu1 %v693_v24  ;;  %607 = vmatprep.subr.bf16.mxu0 %v694_v25  ;;  %v93_v9 = vpack.c.bf16 %v89_v7, %v89_v7  ;;  %v95_v11 = vpack.c.bf16 %v91_v10, %v91_v10 }
  0x1a   :  { %629 = vmatprep.subr.bf16.mxu1 %v695_v27  ;;  %385 = vmatprep.mubr.bf16.mxu0 %v94_v3 }
  0x1b   :  { %425 = vmatprep.mubr.bf16.mxu1 %v96_v6 }
  0x1c   :  { %608 = vmatpush3.bf16.msra.mxu0 %v696_v28 }
  0x1d   :  { %630 = vmatpush3.bf16.msra.mxu1 %v697_v29  ;;  %609 = vmatprep.subr.bf16.mxu0 %v698_v30 }
  0x1e   :  { %631 = vmatprep.subr.bf16.mxu1 %v699_v32 }
  0x20   :  { %610 = vmatpush3.bf16.msra.mxu0 %v700_v34 }
  0x21   :  { %632 = vmatpush3.bf16.msra.mxu1 %v701_v36  ;;  %648 = vmatprep.subr.bf16.mxu0 %v714_v46 }
  0x23   :  { %386 = vmatmul.mubr.bf16.vlgmr.msra.gmra.mxu0 %v93_v9 }
  0x24   :  { %426 = vmatmul.mubr.bf16.vlgmr.msra.gmra.mxu1 %v95_v11  ;;  %649 = vmatpush3.bf16.msra.mxu0 %v702_v8 }
  0x25   :  { %650 = vmatprep.subr.bf16.mxu0 %v714_v46  ;;  %664 = vmatprep.mubr.msk.bf16.mxu0 %vm715_vm4, %v714_v46 }
  0x28   :  { %651 = vmatpush3.bf16.msra.mxu0 %v703_v12 }
  0x29   :  { %652 = vmatprep.subr.bf16.mxu0 %v714_v46 }
  0x2c   :  { %653 = vmatpush3.bf16.msra.mxu0 %v704_v13 }
  0x2d   :  { %654 = vmatprep.subr.bf16.mxu0 %v714_v46 }
  0x30   :  { %655 = vmatpush3.bf16.msra.mxu0 %v705_v14 }
  0x31   :  { %656 = vmatprep.subr.bf16.mxu0 %v714_v46 }
  0x34   :  { %657 = vmatpush3.bf16.msra.mxu0 %v706_v15 }
  0x35   :  { %658 = vmatprep.subr.bf16.mxu0 %v714_v46 }
  0x38   :  { %659 = vmatpush3.bf16.msra.mxu0 %v707_v16 }
  0x39   :  { %660 = vmatprep.subr.bf16.mxu0 %v714_v46 }
  0x3c   :  { %661 = vmatpush3.bf16.msra.mxu0 %v708_v17 }
  0x3d   :  { %662 = vmatprep.subr.bf16.mxu0 %v714_v46 }
  0x40   :  { %663 = vmatpush3.bf16.msra.mxu0 %v709_v18 }
  0xe3   :  { %v611_v19 = vpop.f32.mrf.mxu0 }
  0xe4   :  { %v633_v20 = vpop.f32.mrf.mxu1 }
  0xe5   :  { %v612_v21 = vpop.f32.mrf.mxu0 }
  0xe6   :  { %v613_v22 = vadd.f32 %v612_v21, %v611_v19  ;;  %v634_v23 = vpop.f32.mrf.mxu1 }
  0xe7   :  { %v635_v24 = vadd.f32 %v634_v23, %v633_v20  ;;  %v614_v25 = vpop.f32.mrf.mxu0 }
  0xe8   :  { %v636_v26 = vpop.f32.mrf.mxu1 }
  0xe9   :  { %v428_v27 = vadd.f32 %v635_v24, %v613_v22  ;;  %v615_v28 = vpop.f32.mrf.mxu0 }
  0xea   :  { %v637_v29 = vpop.f32.mrf.mxu1 }
  0xeb   :  { %433 = vst [vmem:[%s894_s5] sm:$0xff] %v428_v27  ;;  %v434_v30 = vpack.c.bf16 %v428_v27, %v428_v27 }
  0xed   :  { %665 = vmatmul.mubr.bf16.vlgmr.msra.gmra.mxu0 %v434_v30 }
 0x1ad   :  { %v533_v31 = vpop.f32.mrf.mxu0 }
 0x1ae   :  { %v594_v32 = vmul.f32 -1.442695, %v533_v31 }
 0x1af   :  { %v666_v33 = vpop.f32.mrf.mxu0 }
 0x1b0   :  { %710 = vpow2.f32 %v594_v32 }
 0x1b1   :  { %v536_v34 = vpop.f32.mrf.mxu0 }
 0x1b3   :  { %v667_v35 = vpop.f32.mrf.mxu0 }
 0x1bd   :  { %v711_v36 = vpop.eup %710 }
 0x1be   :  { %v542_v37 = vadd.f32 1.0, %v711_v36 }
 0x1c0   :  { %712 = vrcp.f32 %v542_v37 }
 0x1cd   :  { %v713_v38 = vpop.eup %712 }
 0x1ce   :  { %545 = vst [vmem:[%s895_s6] sm:$0xff] %v713_v38 }

</bundles_post_ra>
